<compile_context>
chip_gen: v7x
topology: tpu7x:2x2x1
jax: 0.10.0
libtpu: 0.0.40
codegen_flags: <defaults>
</compile_context>

<pallas_src>
import jax
import jax.numpy as jnp
from jax.experimental import pallas as pl
from jax.experimental.pallas import tpu as pltpu

BN_EPS = 1e-5
_LANE = 128


def _round_up(x, m):
    return (x + m - 1) // m * m


def _pick_row_tile(h, w, c_in_p, c_out_p, budget_bytes=4 << 20):
    """Largest divisor of H whose double-buffered (input+output) row-tile fits a
    modest VMEM budget (sized so the same choice also holds on v7x's 64 MiB VMEM)."""
    best = None
    for th in range(1, h + 1):
        if h % th:
            continue
        if (th * w) % 8 and th != h:
            continue  # keep flattened (TH*W) row blocks sublane-aligned
        per_buf = ((th + 2) * (w + 2) * c_in_p + th * w * c_out_p) * 2  # bf16 bytes
        if best is None or 2 * per_buf <= budget_bytes:
            best = th
    return best


def _vmem_limit_bytes(th, w, cp, cop):
    # 2x double-buffered activation streams + (double-buffered) weights + f32 acc.
    stream = ((th + 4) * (w + 2) * cp + th * w * cop) * 2 + 2 * cop * 4
    weights = 9 * cp * cop * 2 + cop * 4
    acc = th * w * cop * 4
    est = 2 * stream + 2 * weights + acc
    return int(min(max(2 * est, 8 << 20), 32 << 20))


def _conv_stats_kernel(xt_ref, xc_ref, xb_ref, w_ref, b_ref, y_ref, st_ref):
    # xt/xb: (1, 1, W+2, Cp)   halo row above/below the tile (border-clamped)
    # xc:    (1, TH, W+2, Cp)  current row-tile, bf16
    # w:     (9, Cp, Cop) bf16 tap-major weights;  b: (1, Cop) f32 conv bias
    # y:     (1, TH*W, Cop)    conv+bias output (pre-BN), bf16
    # st:    (1, 1, 2, Cop)    per-tile per-channel [sum, sum-of-squares], f32
    ib, nhb = pl.program_id(1), pl.num_programs(1)
    th, wp2 = xc_ref.shape[1], xc_ref.shape[2]
    w_out = wp2 - 2
    cop = y_ref.shape[2]

    # Zero the clamped halo row at the top / bottom image border.
    top = jnp.where(ib == 0, jnp.zeros_like(xt_ref[0]), xt_ref[0])        # (1, W+2, Cp)
    bot = jnp.where(ib == nhb - 1, jnp.zeros_like(xb_ref[0]), xb_ref[0])  # (1, W+2, Cp)
    x = jnp.concatenate([top, xc_ref[0], bot], axis=0)                    # (TH+2, W+2, Cp)

    # 3x3 conv as 9 shifted bf16 MXU matmuls with f32 accumulation.
    acc = jnp.zeros((th * w_out, cop), jnp.float32)
    for dy in range(3):
        for dx in range(3):
            lhs = x[dy:dy + th, dx:dx + w_out, :].reshape(th * w_out, -1)
            acc += jnp.dot(lhs, w_ref[dy * 3 + dx],
                           preferred_element_type=jnp.float32)
    acc += b_ref[...]

    y_ref[0] = acc.astype(y_ref.dtype)
    ssum = jnp.sum(acc, axis=0, keepdims=True)
    ssq = jnp.sum(acc * acc, axis=0, keepdims=True)
    st_ref[0, 0] = jnp.concatenate([ssum, ssq], axis=0)


def _scale_shift_relu_kernel(y_ref, sc_ref, sh_ref, o_ref):
    # Folded BatchNorm + ReLU: one FMA + max per element (f32 math, lane-dense store).
    y = y_ref[...].astype(jnp.float32)                    # (1, TH*W, Cop)
    o = y * sc_ref[...][None] + sh_ref[...][None]
    o_ref[...] = jnp.maximum(o, 0.0).astype(o_ref.dtype)


def _conv_bn_relu(x_pad, w9, b, gamma, beta, *, row_tile, out_dtype):
    """One Conv2d(3x3, pad=1) + training-mode BatchNorm2d + ReLU.

    x_pad: (N, H, W+2, Cp) bf16, zero-padded along W and channel (lane) dims.
    w9:    (9, Cp, Cop) bf16;  b/gamma/beta: (Cop,) f32 (zero-padded).
    Returns (N, H*W, Cop) in `out_dtype`.
    """
    N, H, Wp2, Cp = x_pad.shape
    W = Wp2 - 2
    Cop = w9.shape[2]
    TH = row_tile
    assert H % TH == 0, (H, TH)
    nhb = H // TH
    assert (TH * W) % 8 == 0 or nhb == 1, (TH, W)
    vmem_limit = _vmem_limit_bytes(TH, W, Cp, Cop)

    y, stats = pl.pallas_call(
        _conv_stats_kernel,
        out_shape=(jax.ShapeDtypeStruct((N, H * W, Cop), jnp.bfloat16),
                   jax.ShapeDtypeStruct((N, nhb, 2, Cop), jnp.float32)),
        grid_spec=pltpu.PrefetchScalarGridSpec(
            num_scalar_prefetch=0,
            grid=(N, nhb),
            in_specs=[
                # 1-row halo above / below the row-tile (clamped at the border;
                # the kernel zero-masks the clamped row).
                pl.BlockSpec((1, 1, Wp2, Cp),
                             lambda n, i: (n, jnp.maximum(i * TH - 1, 0), 0, 0)),
                pl.BlockSpec((1, TH, Wp2, Cp), lambda n, i: (n, i, 0, 0)),
                pl.BlockSpec((1, 1, Wp2, Cp),
                             lambda n, i: (n, jnp.minimum(i * TH + TH, H - 1), 0, 0)),
                pl.BlockSpec((9, Cp, Cop), lambda n, i: (0, 0, 0)),   # weights resident
                pl.BlockSpec((1, Cop), lambda n, i: (0, 0)),          # bias resident
            ],
            out_specs=[
                pl.BlockSpec((1, TH * W, Cop), lambda n, i: (n, i, 0)),
                pl.BlockSpec((1, 1, 2, Cop), lambda n, i: (n, i, 0, 0)),
            ]),
        compiler_params=pltpu.CompilerParams(
            dimension_semantics=("parallel", "parallel"),
            vmem_limit_bytes=vmem_limit),
    )(x_pad, x_pad, x_pad, w9, b.reshape(1, Cop))

    # Tiny O(Cout) reduction + BN fold, outside the kernel (f32).
    # mean^2 << E[x^2] here, so E[x^2]-mean^2 has no meaningful cancellation.
    m = float(N * H * W)
    s = jnp.sum(stats, axis=(0, 1))                       # (2, Cop)
    mean = s[0] / m
    var = jnp.maximum(s[1] / m - mean * mean, 0.0)        # biased batch variance
    scale = gamma * jax.lax.rsqrt(var + BN_EPS)
    shift = beta - mean * scale

    out = pl.pallas_call(
        _scale_shift_relu_kernel,
        out_shape=jax.ShapeDtypeStruct((N, H * W, Cop), out_dtype),
        grid_spec=pltpu.PrefetchScalarGridSpec(
            num_scalar_prefetch=0,
            grid=(N, nhb),
            in_specs=[
                pl.BlockSpec((1, TH * W, Cop), lambda n, i: (n, i, 0)),
                pl.BlockSpec((1, Cop), lambda n, i: (0, 0)),
                pl.BlockSpec((1, Cop), lambda n, i: (0, 0)),
            ],
            out_specs=pl.BlockSpec((1, TH * W, Cop), lambda n, i: (n, i, 0))),
        compiler_params=pltpu.CompilerParams(
            dimension_semantics=("parallel", "parallel"),
            vmem_limit_bytes=vmem_limit),
    )(y, scale.reshape(1, Cop), shift.reshape(1, Cop))
    return out


def prepare_params(params, in_ch, out_ch):
    """One-time weight/param layout prep (hoisted out of the per-forward path):
    OIHW -> tap-major (9, Cin_pad, Cout_pad) bf16; per-channel vectors zero-padded
    to lane-aligned width (padded gamma/beta = 0 so padded channels stay 0)."""
    cp_in = _round_up(in_ch, _LANE)
    cop = _round_up(out_ch, _LANE)

    def prep_w(w, ci, cip):
        wm = jnp.transpose(w, (2, 3, 1, 0))                               # (3,3,I,O)
        wm = jnp.pad(wm, ((0, 0), (0, 0), (0, cip - ci), (0, cop - out_ch)))
        return wm.reshape(9, cip, cop).astype(jnp.bfloat16)

    def prep_v(v):
        return jnp.pad(v.astype(jnp.float32), (0, cop - out_ch))

    return {
        "w1": prep_w(params["w1"], in_ch, cp_in),
        "b1": prep_v(params["b1"]), "g1": prep_v(params["g1"]), "beta1": prep_v(params["beta1"]),
        "w2": prep_w(params["w2"], out_ch, cop),
        "b2": prep_v(params["b2"]), "g2": prep_v(params["g2"]), "beta2": prep_v(params["beta2"]),
    }


def double_conv(x_nchw, prep, *, out_ch, row_tile=None):
    N, Cin, H, W = x_nchw.shape
    cp1 = prep["w1"].shape[1]       # padded in-channels of conv1
    cop = prep["w1"].shape[2]       # padded out-channels (lane dim, multiple of 128)
    th = row_tile if row_tile is not None else _pick_row_tile(H, W, max(cp1, cop), cop)

    x = jnp.transpose(x_nchw, (0, 2, 3, 1))                       # NCHW -> NHWC
    x = jnp.pad(x, ((0, 0), (0, 0), (1, 1), (0, cp1 - Cin)))      # W halo + lane pad
    x = x.astype(jnp.bfloat16)

    y1 = _conv_bn_relu(x, prep["w1"], prep["b1"], prep["g1"], prep["beta1"],
                       row_tile=th, out_dtype=jnp.bfloat16)       # (N, H*W, cop) bf16
    y1 = jnp.pad(y1.reshape(N, H, W, cop), ((0, 0), (0, 0), (1, 1), (0, 0)))
    y2 = _conv_bn_relu(y1, prep["w2"], prep["b2"], prep["g2"], prep["beta2"],
                       row_tile=th, out_dtype=jnp.float32)        # (N, H*W, cop) f32
    y2 = y2.reshape(N, H, W, cop)[..., :out_ch]
    return jnp.transpose(y2, (0, 3, 1, 2))                        # NHWC -> NCHW


def init_params(key, in_ch, out_ch):
    k1, k2, k3, k4 = jax.random.split(key, 4)
    return {
        "w1": 0.1 * jax.random.normal(k1, (out_ch, in_ch, 3, 3), jnp.float32),
        "b1": 0.1 * jax.random.normal(k2, (out_ch,), jnp.float32),
        "g1": jnp.ones((out_ch,), jnp.float32),      # BatchNorm2d default init
        "beta1": jnp.zeros((out_ch,), jnp.float32),
        "w2": 0.1 * jax.random.normal(k3, (out_ch, out_ch, 3, 3), jnp.float32),
        "b2": 0.1 * jax.random.normal(k4, (out_ch,), jnp.float32),
        "g2": jnp.ones((out_ch,), jnp.float32),
        "beta2": jnp.zeros((out_ch,), jnp.float32),
    }


def _reference(x_nchw, params):
    # pure-JAX f32 reference (NCHW conv + training-mode BN + ReLU)
    def conv(x, w, b):
        y = jax.lax.conv_general_dilated(
            x, w, window_strides=(1, 1), padding=((1, 1), (1, 1)),
            dimension_numbers=("NCHW", "OIHW", "NCHW"))
        return y + b[None, :, None, None]

    def bn_relu(y, g, bt):
        mean = jnp.mean(y, axis=(0, 2, 3), keepdims=True)
        var = jnp.mean(jnp.square(y - mean), axis=(0, 2, 3), keepdims=True)
        y = (y - mean) * jax.lax.rsqrt(var + BN_EPS)
        y = y * g[None, :, None, None] + bt[None, :, None, None]
        return jnp.maximum(y, 0.0)

    y = bn_relu(conv(x_nchw, params["w1"], params["b1"]), params["g1"], params["beta1"])
    y = bn_relu(conv(y, params["w2"], params["b2"]), params["g2"], params["beta2"])
    return y


if __name__ == "__main__":
    key = jax.random.PRNGKey(0)
    kx, kp = jax.random.split(key)
    N, in_ch, out_ch, HW = 2, 4, 8, 16
    x = jax.random.normal(kx, (N, in_ch, HW, HW), jnp.float32)
    params = init_params(kp, in_ch, out_ch)
    prep = prepare_params(params, in_ch, out_ch)

    fwd = jax.jit(double_conv, static_argnames=("out_ch", "row_tile"))
    # row_tile=8 -> grid (N=2, row-tiles=2): exercises the halo fetch/mask path.
    out = jax.block_until_ready(fwd(x, prep, out_ch=out_ch, row_tile=8))
    ref = jax.block_until_ready(_reference(x, params))

    assert out.shape == (N, out_ch, HW, HW), out.shape
    err = jnp.abs(out - ref)
    rms = float(jnp.sqrt(jnp.mean(err * err)))
    # bf16 MXU operands / bf16 activation streams -> ~1e-2-scale deviation from
    # the f32 reference (BN statistics and normalization themselves are f32).
    assert rms < 1.5e-2, rms
    assert jnp.allclose(out, ref, atol=5e-2, rtol=5e-2), float(jnp.max(err))
    print("KERNEL_OK")
</pallas_src>

<mosaic_0001>
module attributes {stable_mosaic.version = 11 : i64} {
  func.func @_conv_stats_kernel(%arg0: i32, %arg1: i32, %arg2: memref<1x1x18x128xbf16, #tpu.memory_space<vmem>>, %arg3: memref<1x8x18x128xbf16, #tpu.memory_space<vmem>>, %arg4: memref<1x1x18x128xbf16, #tpu.memory_space<vmem>>, %arg5: memref<9x128x128xbf16, #tpu.memory_space<vmem>>, %arg6: memref<1x128xf32, #tpu.memory_space<vmem>>, %arg7: memref<1x128x128xbf16, #tpu.memory_space<vmem>>, %arg8: memref<1x1x2x128xf32, #tpu.memory_space<vmem>>) attributes {dimension_semantics = [#tpu.dimension_semantics<parallel>, #tpu.dimension_semantics<parallel>], iteration_bounds = array<i64: 2, 2>, scalar_prefetch = 0 : i64, scratch_operands = 0 : i64, tpu.core_type = #tpu.core_type<tc>, window_params = [{transform_indices = @transform_0, window_bounds = array<i64: 1, 1, 18, 128>}, {transform_indices = @transform_1, window_bounds = array<i64: 1, 8, 18, 128>}, {transform_indices = @transform_2, window_bounds = array<i64: 1, 1, 18, 128>}, {pipeline_mode = #tpu.pipeline_mode<synchronous>, transform_indices = @transform_3, window_bounds = array<i64: 9, 128, 128>}, {pipeline_mode = #tpu.pipeline_mode<synchronous>, transform_indices = @transform_4, window_bounds = array<i64: 1, 128>}, {transform_indices = @transform_5, window_bounds = array<i64: 1, 128, 128>}, {transform_indices = @transform_6, window_bounds = array<i64: 1, 1, 2, 128>}]} {
    %c0_i32 = arith.constant 0 : i32
    %0 = arith.cmpi eq, %arg1, %c0_i32 : i32
    %cst = arith.constant 0.000000e+00 : bf16
    %1 = vector.broadcast %cst : bf16 to vector<1x18x128xbf16>
    %c0 = arith.constant 0 : index
    %c0_0 = arith.constant 0 : index
    %c0_1 = arith.constant 0 : index
    %c0_2 = arith.constant 0 : index
    %2 = vector.load %arg2[%c0, %c0_0, %c0_1, %c0_2] : memref<1x1x18x128xbf16, #tpu.memory_space<vmem>>, vector<1x1x18x128xbf16>
    %3 = vector.shape_cast %2 : vector<1x1x18x128xbf16> to vector<1x18x128xbf16>
    %4 = arith.select %0, %1, %3 : vector<1x18x128xbf16>
    %c1_i32 = arith.constant 1 : i32
    %5 = arith.cmpi eq, %arg1, %c1_i32 : i32
    %cst_3 = arith.constant 0.000000e+00 : bf16
    %6 = vector.broadcast %cst_3 : bf16 to vector<1x18x128xbf16>
    %c0_4 = arith.constant 0 : index
    %c0_5 = arith.constant 0 : index
    %c0_6 = arith.constant 0 : index
    %c0_7 = arith.constant 0 : index
    %7 = vector.load %arg4[%c0_4, %c0_5, %c0_6, %c0_7] : memref<1x1x18x128xbf16, #tpu.memory_space<vmem>>, vector<1x1x18x128xbf16>
    %8 = vector.shape_cast %7 : vector<1x1x18x128xbf16> to vector<1x18x128xbf16>
    %9 = arith.select %5, %6, %8 : vector<1x18x128xbf16>
    %c0_8 = arith.constant 0 : index
    %c0_9 = arith.constant 0 : index
    %c0_10 = arith.constant 0 : index
    %c0_11 = arith.constant 0 : index
    %10 = vector.load %arg3[%c0_8, %c0_9, %c0_10, %c0_11] : memref<1x8x18x128xbf16, #tpu.memory_space<vmem>>, vector<1x8x18x128xbf16>
    %11 = vector.shape_cast %10 : vector<1x8x18x128xbf16> to vector<8x18x128xbf16>
    %12 = tpu.concatenate %4, %11, %9 in 0 : vector<1x18x128xbf16>, vector<8x18x128xbf16>, vector<1x18x128xbf16> -> vector<10x18x128xbf16>
    %cst_12 = arith.constant 0.000000e+00 : f32
    %13 = vector.broadcast %cst_12 : f32 to vector<128x128xf32>
    %14 = vector.extract_strided_slice %12 {offsets = [0, 0, 0], sizes = [8, 16, 128], strides = [1, 1, 1]} : vector<10x18x128xbf16> to vector<8x16x128xbf16>
    %15 = vector.shape_cast %14 : vector<8x16x128xbf16> to vector<128x128xbf16>
    %c0_13 = arith.constant 0 : index
    %c0_14 = arith.constant 0 : index
    %c0_15 = arith.constant 0 : index
    %16 = vector.load %arg5[%c0_13, %c0_14, %c0_15] : memref<9x128x128xbf16, #tpu.memory_space<vmem>>, vector<1x128x128xbf16>
    %17 = vector.shape_cast %16 : vector<1x128x128xbf16> to vector<128x128xbf16>
    %cst_16 = arith.constant dense<0.000000e+00> : vector<128x128xf32>
    %18 = tpu.matmul %15, %17, %cst_16 {dimension_numbers = #tpu.dot_dimension_numbers<[1], [0], [0], [1], [0, 0, 1, 1], [], []>} : vector<128x128xbf16>, vector<128x128xbf16>, vector<128x128xf32> -> vector<128x128xf32>
    %19 = arith.addf %13, %18 : vector<128x128xf32>
    %20 = vector.extract_strided_slice %12 {offsets = [0, 1, 0], sizes = [8, 16, 128], strides = [1, 1, 1]} : vector<10x18x128xbf16> to vector<8x16x128xbf16>
    %21 = vector.shape_cast %20 : vector<8x16x128xbf16> to vector<128x128xbf16>
    %c1 = arith.constant 1 : index
    %c0_17 = arith.constant 0 : index
    %c0_18 = arith.constant 0 : index
    %22 = vector.load %arg5[%c1, %c0_17, %c0_18] : memref<9x128x128xbf16, #tpu.memory_space<vmem>>, vector<1x128x128xbf16>
    %23 = vector.shape_cast %22 : vector<1x128x128xbf16> to vector<128x128xbf16>
    %cst_19 = arith.constant dense<0.000000e+00> : vector<128x128xf32>
    %24 = tpu.matmul %21, %23, %cst_19 {dimension_numbers = #tpu.dot_dimension_numbers<[1], [0], [0], [1], [0, 0, 1, 1], [], []>} : vector<128x128xbf16>, vector<128x128xbf16>, vector<128x128xf32> -> vector<128x128xf32>
    %25 = arith.addf %19, %24 : vector<128x128xf32>
    %26 = vector.extract_strided_slice %12 {offsets = [0, 2, 0], sizes = [8, 16, 128], strides = [1, 1, 1]} : vector<10x18x128xbf16> to vector<8x16x128xbf16>
    %27 = vector.shape_cast %26 : vector<8x16x128xbf16> to vector<128x128xbf16>
    %c2 = arith.constant 2 : index
    %c0_20 = arith.constant 0 : index
    %c0_21 = arith.constant 0 : index
    %28 = vector.load %arg5[%c2, %c0_20, %c0_21] : memref<9x128x128xbf16, #tpu.memory_space<vmem>>, vector<1x128x128xbf16>
    %29 = vector.shape_cast %28 : vector<1x128x128xbf16> to vector<128x128xbf16>
    %cst_22 = arith.constant dense<0.000000e+00> : vector<128x128xf32>
    %30 = tpu.matmul %27, %29, %cst_22 {dimension_numbers = #tpu.dot_dimension_numbers<[1], [0], [0], [1], [0, 0, 1, 1], [], []>} : vector<128x128xbf16>, vector<128x128xbf16>, vector<128x128xf32> -> vector<128x128xf32>
    %31 = arith.addf %25, %30 : vector<128x128xf32>
    %32 = vector.extract_strided_slice %12 {offsets = [1, 0, 0], sizes = [8, 16, 128], strides = [1, 1, 1]} : vector<10x18x128xbf16> to vector<8x16x128xbf16>
    %33 = vector.shape_cast %32 : vector<8x16x128xbf16> to vector<128x128xbf16>
    %c3 = arith.constant 3 : index
    %c0_23 = arith.constant 0 : index
    %c0_24 = arith.constant 0 : index
    %34 = vector.load %arg5[%c3, %c0_23, %c0_24] : memref<9x128x128xbf16, #tpu.memory_space<vmem>>, vector<1x128x128xbf16>
    %35 = vector.shape_cast %34 : vector<1x128x128xbf16> to vector<128x128xbf16>
    %cst_25 = arith.constant dense<0.000000e+00> : vector<128x128xf32>
    %36 = tpu.matmul %33, %35, %cst_25 {dimension_numbers = #tpu.dot_dimension_numbers<[1], [0], [0], [1], [0, 0, 1, 1], [], []>} : vector<128x128xbf16>, vector<128x128xbf16>, vector<128x128xf32> -> vector<128x128xf32>
    %37 = arith.addf %31, %36 : vector<128x128xf32>
    %38 = vector.extract_strided_slice %12 {offsets = [1, 1, 0], sizes = [8, 16, 128], strides = [1, 1, 1]} : vector<10x18x128xbf16> to vector<8x16x128xbf16>
    %39 = vector.shape_cast %38 : vector<8x16x128xbf16> to vector<128x128xbf16>
    %c4 = arith.constant 4 : index
    %c0_26 = arith.constant 0 : index
    %c0_27 = arith.constant 0 : index
    %40 = vector.load %arg5[%c4, %c0_26, %c0_27] : memref<9x128x128xbf16, #tpu.memory_space<vmem>>, vector<1x128x128xbf16>
    %41 = vector.shape_cast %40 : vector<1x128x128xbf16> to vector<128x128xbf16>
    %cst_28 = arith.constant dense<0.000000e+00> : vector<128x128xf32>
    %42 = tpu.matmul %39, %41, %cst_28 {dimension_numbers = #tpu.dot_dimension_numbers<[1], [0], [0], [1], [0, 0, 1, 1], [], []>} : vector<128x128xbf16>, vector<128x128xbf16>, vector<128x128xf32> -> vector<128x128xf32>
    %43 = arith.addf %37, %42 : vector<128x128xf32>
    %44 = vector.extract_strided_slice %12 {offsets = [1, 2, 0], sizes = [8, 16, 128], strides = [1, 1, 1]} : vector<10x18x128xbf16> to vector<8x16x128xbf16>
    %45 = vector.shape_cast %44 : vector<8x16x128xbf16> to vector<128x128xbf16>
    %c5 = arith.constant 5 : index
    %c0_29 = arith.constant 0 : index
    %c0_30 = arith.constant 0 : index
    %46 = vector.load %arg5[%c5, %c0_29, %c0_30] : memref<9x128x128xbf16, #tpu.memory_space<vmem>>, vector<1x128x128xbf16>
    %47 = vector.shape_cast %46 : vector<1x128x128xbf16> to vector<128x128xbf16>
    %cst_31 = arith.constant dense<0.000000e+00> : vector<128x128xf32>
    %48 = tpu.matmul %45, %47, %cst_31 {dimension_numbers = #tpu.dot_dimension_numbers<[1], [0], [0], [1], [0, 0, 1, 1], [], []>} : vector<128x128xbf16>, vector<128x128xbf16>, vector<128x128xf32> -> vector<128x128xf32>
    %49 = arith.addf %43, %48 : vector<128x128xf32>
    %50 = vector.extract_strided_slice %12 {offsets = [2, 0, 0], sizes = [8, 16, 128], strides = [1, 1, 1]} : vector<10x18x128xbf16> to vector<8x16x128xbf16>
    %51 = vector.shape_cast %50 : vector<8x16x128xbf16> to vector<128x128xbf16>
    %c6 = arith.constant 6 : index
    %c0_32 = arith.constant 0 : index
    %c0_33 = arith.constant 0 : index
    %52 = vector.load %arg5[%c6, %c0_32, %c0_33] : memref<9x128x128xbf16, #tpu.memory_space<vmem>>, vector<1x128x128xbf16>
    %53 = vector.shape_cast %52 : vector<1x128x128xbf16> to vector<128x128xbf16>
    %cst_34 = arith.constant dense<0.000000e+00> : vector<128x128xf32>
    %54 = tpu.matmul %51, %53, %cst_34 {dimension_numbers = #tpu.dot_dimension_numbers<[1], [0], [0], [1], [0, 0, 1, 1], [], []>} : vector<128x128xbf16>, vector<128x128xbf16>, vector<128x128xf32> -> vector<128x128xf32>
    %55 = arith.addf %49, %54 : vector<128x128xf32>
    %56 = vector.extract_strided_slice %12 {offsets = [2, 1, 0], sizes = [8, 16, 128], strides = [1, 1, 1]} : vector<10x18x128xbf16> to vector<8x16x128xbf16>
    %57 = vector.shape_cast %56 : vector<8x16x128xbf16> to vector<128x128xbf16>
    %c7 = arith.constant 7 : index
    %c0_35 = arith.constant 0 : index
    %c0_36 = arith.constant 0 : index
    %58 = vector.load %arg5[%c7, %c0_35, %c0_36] : memref<9x128x128xbf16, #tpu.memory_space<vmem>>, vector<1x128x128xbf16>
    %59 = vector.shape_cast %58 : vector<1x128x128xbf16> to vector<128x128xbf16>
    %cst_37 = arith.constant dense<0.000000e+00> : vector<128x128xf32>
    %60 = tpu.matmul %57, %59, %cst_37 {dimension_numbers = #tpu.dot_dimension_numbers<[1], [0], [0], [1], [0, 0, 1, 1], [], []>} : vector<128x128xbf16>, vector<128x128xbf16>, vector<128x128xf32> -> vector<128x128xf32>
    %61 = arith.addf %55, %60 : vector<128x128xf32>
    %62 = vector.extract_strided_slice %12 {offsets = [2, 2, 0], sizes = [8, 16, 128], strides = [1, 1, 1]} : vector<10x18x128xbf16> to vector<8x16x128xbf16>
    %63 = vector.shape_cast %62 : vector<8x16x128xbf16> to vector<128x128xbf16>
    %c8 = arith.constant 8 : index
    %c0_38 = arith.constant 0 : index
    %c0_39 = arith.constant 0 : index
    %64 = vector.load %arg5[%c8, %c0_38, %c0_39] : memref<9x128x128xbf16, #tpu.memory_space<vmem>>, vector<1x128x128xbf16>
    %65 = vector.shape_cast %64 : vector<1x128x128xbf16> to vector<128x128xbf16>
    %cst_40 = arith.constant dense<0.000000e+00> : vector<128x128xf32>
    %66 = tpu.matmul %63, %65, %cst_40 {dimension_numbers = #tpu.dot_dimension_numbers<[1], [0], [0], [1], [0, 0, 1, 1], [], []>} : vector<128x128xbf16>, vector<128x128xbf16>, vector<128x128xf32> -> vector<128x128xf32>
    %67 = arith.addf %61, %66 : vector<128x128xf32>
    %c0_41 = arith.constant 0 : index
    %c0_42 = arith.constant 0 : index
    %68 = vector.load %arg6[%c0_41, %c0_42] : memref<1x128xf32, #tpu.memory_space<vmem>>, vector<1x128xf32>
    %69 = vector.broadcast %68 : vector<1x128xf32> to vector<128x128xf32>
    %70 = arith.addf %67, %69 : vector<128x128xf32>
    %71 = arith.truncf %70 : vector<128x128xf32> to vector<128x128xbf16>
    %c0_43 = arith.constant 0 : index
    %c0_44 = arith.constant 0 : index
    %c0_45 = arith.constant 0 : index
    %72 = vector.load %arg7[%c0_43, %c0_44, %c0_45] : memref<1x128x128xbf16, #tpu.memory_space<vmem>>, vector<1x128x128xbf16>
    %73 = vector.shape_cast %72 : vector<1x128x128xbf16> to vector<128x128xbf16>
    %74 = vector.shape_cast %71 : vector<128x128xbf16> to vector<1x128x128xbf16>
    tpu.vector_store %arg7[%c0_43, %c0_44, %c0_45], %74 {strides = array<i32>} : memref<1x128x128xbf16, #tpu.memory_space<vmem>>, vector<1x128x128xbf16>,
    %cst_46 = arith.constant dense<0.000000e+00> : vector<128xf32>
    %75 = vector.multi_reduction <add>, %70, %cst_46 [0] : vector<128x128xf32> to vector<128xf32>
    %76 = vector.shape_cast %75 : vector<128xf32> to vector<1x128xf32>
    %77 = arith.mulf %70, %70 : vector<128x128xf32>
    %cst_47 = arith.constant dense<0.000000e+00> : vector<128xf32>
    %78 = vector.multi_reduction <add>, %77, %cst_47 [0] : vector<128x128xf32> to vector<128xf32>
    %79 = vector.shape_cast %78 : vector<128xf32> to vector<1x128xf32>
    %80 = tpu.concatenate %76, %79 in 0 : vector<1x128xf32>, vector<1x128xf32> -> vector<2x128xf32>
    %c0_48 = arith.constant 0 : index
    %c0_49 = arith.constant 0 : index
    %c0_50 = arith.constant 0 : index
    %c0_51 = arith.constant 0 : index
    %81 = vector.load %arg8[%c0_48, %c0_49, %c0_50, %c0_51] : memref<1x1x2x128xf32, #tpu.memory_space<vmem>>, vector<1x1x2x128xf32>
    %82 = vector.shape_cast %81 : vector<1x1x2x128xf32> to vector<2x128xf32>
    %83 = vector.shape_cast %80 : vector<2x128xf32> to vector<1x1x2x128xf32>
    tpu.vector_store %arg8[%c0_48, %c0_49, %c0_50, %c0_51], %83 {strides = array<i32>} : memref<1x1x2x128xf32, #tpu.memory_space<vmem>>, vector<1x1x2x128xf32>,
    return
  }
  func.func @transform_0(%arg0: i32, %arg1: i32) -> (i32, i32, i32, i32) {
    %c8_i32 = arith.constant 8 : i32
    %0 = arith.muli %arg1, %c8_i32 : i32
    %c1_i32 = arith.constant 1 : i32
    %1 = arith.subi %0, %c1_i32 : i32
    %c0_i32 = arith.constant 0 : i32
    %2 = arith.maxsi %1, %c0_i32 : i32
    %c0_i32_0 = arith.constant 0 : i32
    %c0_i32_1 = arith.constant 0 : i32
    %c0_i32_2 = arith.constant 0 : i32
    return %arg0, %2, %c0_i32_0, %c0_i32_1 : i32, i32, i32, i32
  }
  func.func @transform_1(%arg0: i32, %arg1: i32) -> (i32, i32, i32, i32) {
    %c0_i32 = arith.constant 0 : i32
    %c0_i32_0 = arith.constant 0 : i32
    %c0_i32_1 = arith.constant 0 : i32
    return %arg0, %arg1, %c0_i32, %c0_i32_0 : i32, i32, i32, i32
  }
  func.func @transform_2(%arg0: i32, %arg1: i32) -> (i32, i32, i32, i32) {
    %c8_i32 = arith.constant 8 : i32
    %0 = arith.muli %arg1, %c8_i32 : i32
    %c8_i32_0 = arith.constant 8 : i32
    %1 = arith.addi %0, %c8_i32_0 : i32
    %c15_i32 = arith.constant 15 : i32
    %2 = arith.minsi %1, %c15_i32 : i32
    %c0_i32 = arith.constant 0 : i32
    %c0_i32_1 = arith.constant 0 : i32
    %c0_i32_2 = arith.constant 0 : i32
    return %arg0, %2, %c0_i32, %c0_i32_1 : i32, i32, i32, i32
  }
  func.func @transform_3(%arg0: i32, %arg1: i32) -> (i32, i32, i32) {
    %c0_i32 = arith.constant 0 : i32
    %c0_i32_0 = arith.constant 0 : i32
    %c0_i32_1 = arith.constant 0 : i32
    %c0_i32_2 = arith.constant 0 : i32
    return %c0_i32, %c0_i32_0, %c0_i32_1 : i32, i32, i32
  }
  func.func @transform_4(%arg0: i32, %arg1: i32) -> (i32, i32) {
    %c0_i32 = arith.constant 0 : i32
    %c0_i32_0 = arith.constant 0 : i32
    %c0_i32_1 = arith.constant 0 : i32
    return %c0_i32, %c0_i32_0 : i32, i32
  }
  func.func @transform_5(%arg0: i32, %arg1: i32) -> (i32, i32, i32) {
    %c0_i32 = arith.constant 0 : i32
    %c0_i32_0 = arith.constant 0 : i32
    return %arg0, %arg1, %c0_i32 : i32, i32, i32
  }
  func.func @transform_6(%arg0: i32, %arg1: i32) -> (i32, i32, i32, i32) {
    %c0_i32 = arith.constant 0 : i32
    %c0_i32_0 = arith.constant 0 : i32
    %c0_i32_1 = arith.constant 0 : i32
    return %arg0, %arg1, %c0_i32, %c0_i32_0 : i32, i32, i32, i32
  }
}

module attributes {stable_mosaic.version = 11 : i64} {
  func.func @_scale_shift_relu_kernel(%arg0: i32, %arg1: i32, %arg2: memref<1x128x128xbf16, #tpu.memory_space<vmem>>, %arg3: memref<1x128xf32, #tpu.memory_space<vmem>>, %arg4: memref<1x128xf32, #tpu.memory_space<vmem>>, %arg5: memref<1x128x128xbf16, #tpu.memory_space<vmem>>) attributes {dimension_semantics = [#tpu.dimension_semantics<parallel>, #tpu.dimension_semantics<parallel>], iteration_bounds = array<i64: 2, 2>, scalar_prefetch = 0 : i64, scratch_operands = 0 : i64, tpu.core_type = #tpu.core_type<tc>, window_params = [{transform_indices = @transform_0, window_bounds = array<i64: 1, 128, 128>}, {pipeline_mode = #tpu.pipeline_mode<synchronous>, transform_indices = @transform_1, window_bounds = array<i64: 1, 128>}, {pipeline_mode = #tpu.pipeline_mode<synchronous>, transform_indices = @transform_2, window_bounds = array<i64: 1, 128>}, {transform_indices = @transform_3, window_bounds = array<i64: 1, 128, 128>}]} {
    %c0 = arith.constant 0 : index
    %c0_0 = arith.constant 0 : index
    %c0_1 = arith.constant 0 : index
    %0 = vector.load %arg2[%c0, %c0_0, %c0_1] : memref<1x128x128xbf16, #tpu.memory_space<vmem>>, vector<1x128x128xbf16>
    %1 = arith.extf %0 : vector<1x128x128xbf16> to vector<1x128x128xf32>
    %c0_2 = arith.constant 0 : index
    %c0_3 = arith.constant 0 : index
    %2 = vector.load %arg3[%c0_2, %c0_3] : memref<1x128xf32, #tpu.memory_space<vmem>>, vector<1x128xf32>
    %3 = vector.shape_cast %2 : vector<1x128xf32> to vector<1x1x128xf32>
    %4 = vector.broadcast %3 : vector<1x1x128xf32> to vector<1x128x128xf32>
    %5 = arith.mulf %1, %4 : vector<1x128x128xf32>
    %c0_4 = arith.constant 0 : index
    %c0_5 = arith.constant 0 : index
    %6 = vector.load %arg4[%c0_4, %c0_5] : memref<1x128xf32, #tpu.memory_space<vmem>>, vector<1x128xf32>
    %7 = vector.shape_cast %6 : vector<1x128xf32> to vector<1x1x128xf32>
    %8 = vector.broadcast %7 : vector<1x1x128xf32> to vector<1x128x128xf32>
    %9 = arith.addf %5, %8 : vector<1x128x128xf32>
    %cst = arith.constant 0.000000e+00 : f32
    %10 = vector.broadcast %cst : f32 to vector<1x128x128xf32>
    %11 = arith.maximumf %9, %10 : vector<1x128x128xf32>
    %12 = arith.truncf %11 : vector<1x128x128xf32> to vector<1x128x128xbf16>
    %c0_6 = arith.constant 0 : index
    %c0_7 = arith.constant 0 : index
    %c0_8 = arith.constant 0 : index
    %13 = vector.load %arg5[%c0_6, %c0_7, %c0_8] : memref<1x128x128xbf16, #tpu.memory_space<vmem>>, vector<1x128x128xbf16>
    tpu.vector_store %arg5[%c0_6, %c0_7, %c0_8], %12 {strides = array<i32>} : memref<1x128x128xbf16, #tpu.memory_space<vmem>>, vector<1x128x128xbf16>,
    return
  }
  func.func @transform_0(%arg0: i32, %arg1: i32) -> (i32, i32, i32) {
    %c0_i32 = arith.constant 0 : i32
    %c0_i32_0 = arith.constant 0 : i32
    return %arg0, %arg1, %c0_i32 : i32, i32, i32
  }
  func.func @transform_1(%arg0: i32, %arg1: i32) -> (i32, i32) {
    %c0_i32 = arith.constant 0 : i32
    %c0_i32_0 = arith.constant 0 : i32
    %c0_i32_1 = arith.constant 0 : i32
    return %c0_i32, %c0_i32_0 : i32, i32
  }
  func.func @transform_2(%arg0: i32, %arg1: i32) -> (i32, i32) {
    %c0_i32 = arith.constant 0 : i32
    %c0_i32_0 = arith.constant 0 : i32
    %c0_i32_1 = arith.constant 0 : i32
    return %c0_i32, %c0_i32_0 : i32, i32
  }
  func.func @transform_3(%arg0: i32, %arg1: i32) -> (i32, i32, i32) {
    %c0_i32 = arith.constant 0 : i32
    %c0_i32_0 = arith.constant 0 : i32
    return %arg0, %arg1, %c0_i32 : i32, i32, i32
  }
}

module attributes {stable_mosaic.version = 11 : i64} {
  func.func @_scale_shift_relu_kernel(%arg0: i32, %arg1: i32, %arg2: memref<1x128x128xbf16, #tpu.memory_space<vmem>>, %arg3: memref<1x128xf32, #tpu.memory_space<vmem>>, %arg4: memref<1x128xf32, #tpu.memory_space<vmem>>, %arg5: memref<1x128x128xf32, #tpu.memory_space<vmem>>) attributes {dimension_semantics = [#tpu.dimension_semantics<parallel>, #tpu.dimension_semantics<parallel>], iteration_bounds = array<i64: 2, 2>, scalar_prefetch = 0 : i64, scratch_operands = 0 : i64, tpu.core_type = #tpu.core_type<tc>, window_params = [{transform_indices = @transform_0, window_bounds = array<i64: 1, 128, 128>}, {pipeline_mode = #tpu.pipeline_mode<synchronous>, transform_indices = @transform_1, window_bounds = array<i64: 1, 128>}, {pipeline_mode = #tpu.pipeline_mode<synchronous>, transform_indices = @transform_2, window_bounds = array<i64: 1, 128>}, {transform_indices = @transform_3, window_bounds = array<i64: 1, 128, 128>}]} {
    %c0 = arith.constant 0 : index
    %c0_0 = arith.constant 0 : index
    %c0_1 = arith.constant 0 : index
    %0 = vector.load %arg2[%c0, %c0_0, %c0_1] : memref<1x128x128xbf16, #tpu.memory_space<vmem>>, vector<1x128x128xbf16>
    %1 = arith.extf %0 : vector<1x128x128xbf16> to vector<1x128x128xf32>
    %c0_2 = arith.constant 0 : index
    %c0_3 = arith.constant 0 : index
    %2 = vector.load %arg3[%c0_2, %c0_3] : memref<1x128xf32, #tpu.memory_space<vmem>>, vector<1x128xf32>
    %3 = vector.shape_cast %2 : vector<1x128xf32> to vector<1x1x128xf32>
    %4 = vector.broadcast %3 : vector<1x1x128xf32> to vector<1x128x128xf32>
    %5 = arith.mulf %1, %4 : vector<1x128x128xf32>
    %c0_4 = arith.constant 0 : index
    %c0_5 = arith.constant 0 : index
    %6 = vector.load %arg4[%c0_4, %c0_5] : memref<1x128xf32, #tpu.memory_space<vmem>>, vector<1x128xf32>
    %7 = vector.shape_cast %6 : vector<1x128xf32> to vector<1x1x128xf32>
    %8 = vector.broadcast %7 : vector<1x1x128xf32> to vector<1x128x128xf32>
    %9 = arith.addf %5, %8 : vector<1x128x128xf32>
    %cst = arith.constant 0.000000e+00 : f32
    %10 = vector.broadcast %cst : f32 to vector<1x128x128xf32>
    %11 = arith.maximumf %9, %10 : vector<1x128x128xf32>
    %c0_6 = arith.constant 0 : index
    %c0_7 = arith.constant 0 : index
    %c0_8 = arith.constant 0 : index
    %12 = vector.load %arg5[%c0_6, %c0_7, %c0_8] : memref<1x128x128xf32, #tpu.memory_space<vmem>>, vector<1x128x128xf32>
    tpu.vector_store %arg5[%c0_6, %c0_7, %c0_8], %11 {strides = array<i32>} : memref<1x128x128xf32, #tpu.memory_space<vmem>>, vector<1x128x128xf32>,
    return
  }
  func.func @transform_0(%arg0: i32, %arg1: i32) -> (i32, i32, i32) {
    %c0_i32 = arith.constant 0 : i32
    %c0_i32_0 = arith.constant 0 : i32
    return %arg0, %arg1, %c0_i32 : i32, i32, i32
  }
  func.func @transform_1(%arg0: i32, %arg1: i32) -> (i32, i32) {
    %c0_i32 = arith.constant 0 : i32
    %c0_i32_0 = arith.constant 0 : i32
    %c0_i32_1 = arith.constant 0 : i32
    return %c0_i32, %c0_i32_0 : i32, i32
  }
  func.func @transform_2(%arg0: i32, %arg1: i32) -> (i32, i32) {
    %c0_i32 = arith.constant 0 : i32
    %c0_i32_0 = arith.constant 0 : i32
    %c0_i32_1 = arith.constant 0 : i32
    return %c0_i32, %c0_i32_0 : i32, i32
  }
  func.func @transform_3(%arg0: i32, %arg1: i32) -> (i32, i32, i32) {
    %c0_i32 = arith.constant 0 : i32
    %c0_i32_0 = arith.constant 0 : i32
    return %arg0, %arg1, %c0_i32 : i32, i32, i32
  }
}

</mosaic_0001>

<bundles_post_ra>
// kernel: double_conv.5
= control target key start
LH: loop header
LB: loop body
LE: loop exit
PB: predicated region body
PF: predicated region fallthrough
CT: control target
= control target key end

     0   :  { %s707_s12 = smov 0   ;;  %s709_s13 = smov 0   ;;  %s827_s0 = inlined_call_operand.vmem [shape: bf16[2,256,128], index: 0, kind: input, shape index: {}]   ;;  %s828_s1 = inlined_call_operand.vmem [shape: f32[1,128], index: 1, kind: input, shape index: {}]   ;;  %s829_s2 = inlined_call_operand.vmem [shape: f32[1,128], index: 2, kind: input, shape index: {}]   ;;  %s830_s3 = inlined_call_operand.vmem [shape: bf16[2,256,128], index: 3, kind: output, shape index: {}]  }
   0x1   :  { %s711_s14 = smov 0   ;;  %s713_s15 = smov 0  }
   0x2   :  { %s715_s16 = smov 0  }
   0x3 LB: > { %s22_s17 = sadd.s32 1, %s677_s14  ;;  %s25_s18 = sadd.s32 1, %s681_s15  ;;  %s685_s16 = sphi %s715_s16, %s13_s16   ;;  %s681_s15 = sphi %s713_s15, %s834_s15   ;;  %s677_s14 = sphi %s711_s14, %s833_s14   ;;  %s673_s13 = sphi %s709_s13, %s832_s13   ;;  %s669_s12 = sphi %s707_s12, %s831_s12  }
   0x4   : > { %p23_p0 = scmp.ge.s32.totalorder %s22_s17, 2  ;;  %p478_p1 = scmp.ge.s32.totalorder %s685_s16, 1 }
   0x5   : > { %p158_p2 = scmp.lt.s32.totalorder %s685_s16, 5 }
   0x6   : > { %s836_s17 = smov (%p23_p0, %s22_s17), 0  ;;  %s838_s18 = smov (!%p23_p0, %s25_s18), %s681_s15 }
   0x7   : > { %p159_p3 = pnand %p478_p1, %p158_p2  ;;  %p27_p4 = scmp.ge.s32.totalorder %s838_s18, 2 }
   0x8   : > { %s479_s19 = sshll.u32 (!%p159_p3), %s669_s12, 4  ;;  %p191_p5 = scmp.lt.s32.totalorder (!%p159_p3), %s673_s13, 1  ;;  %v750_v0 = vld [vmem:[%s828_s1] ss:$0 sm:$0xff] (!%p159_p3) }
   0x9   : > { %s840_s18 = smov (%p27_p4, %s838_s18), 0  ;;  %162 = sbr.rel (%p159_p3) target bundleno = 44 (0x2c), region = 32 }
   0xa   : > { %p193_p6 = scmp.lt.s32.totalorder (!%p159_p3), %s479_s19, 31  ;;  %v759_v9 = vld [vmem:[%s829_s2] ss:$0 sm:$0xff] (!%p159_p3) }
  0x10   : > { %s842_s13 = smov (!%p191_p5, %s673_s13), 1  ;;  %s844_s19 = smov (!%p193_p6, %s479_s19), 31 }
  0x11   : > { %s480_s20 = sshll.u32 %s842_s13, 5 }
  0x12   : > { %s737_s21 = sadd.s32 %s480_s20, %s844_s19 }
  0x13   : > { %s481_s22 = sshll.u32 %s737_s21, 2 }
  0x14   : > { %s745_s25 = scalar_lea.vmem %s827_s0, %s481_s22  ;;  %s784_s5 = scalar_lea.vmem %s830_s3, %s481_s22 }
  0x15   : > { %v522_v1 = vld [vmem:[%s745_s25] sm:$0xff]   ;;  %v593_v2 = vld [vmem:[%s745_s25 + $0x8] sm:$0xff]   ;;  %v594_v3 = vld [vmem:[%s745_s25 + $0x10] sm:$0xff]  }
  0x16   : > { %v523_v4 = vunpack.c.l.bf16 %v522_v1  ;;  %v524_v5 = vunpack.c.h.bf16 %v522_v1  ;;  %v527_v6 = vunpack.c.l.bf16 %v593_v2  ;;  %v528_v7 = vunpack.c.h.bf16 %v593_v2  ;;  %v595_v8 = vld [vmem:[%s745_s25 + $0x18] sm:$0xff]   ;;  %v596_v30 = vld [vmem:[%s745_s25 + $0x20] sm:$0xff]   ;;  %v597_v35 = vld [vmem:[%s745_s25 + $0x28] sm:$0xff]  }
  0x17   : > { %v531_v10 = vunpack.c.l.bf16 %v594_v3  ;;  %v532_v11 = vunpack.c.h.bf16 %v594_v3  ;;  %v535_v12 = vunpack.c.l.bf16 %v595_v8  ;;  %v536_v13 = vunpack.c.h.bf16 %v595_v8  ;;  %v598_v40 = vld [vmem:[%s745_s25 + $0x30] sm:$0xff]   ;;  %v599_v45 = vld [vmem:[%s745_s25 + $0x38] sm:$0xff]  }
  0x18   : > { %v249_v14 = vmul.f32 %v523_v4, %v750_v0  ;;  %v250_v15 = vmul.f32 %v524_v5, %v750_v0  ;;  %v251_v16 = vmul.f32 %v527_v6, %v750_v0  ;;  %v252_v17 = vmul.f32 %v528_v7, %v750_v0 }
  0x19   : > { %v253_v18 = vmul.f32 %v531_v10, %v750_v0  ;;  %v254_v19 = vmul.f32 %v532_v11, %v750_v0  ;;  %v255_v20 = vmul.f32 %v535_v12, %v750_v0  ;;  %v256_v21 = vmul.f32 %v536_v13, %v750_v0 }
  0x1a   : > { %v272_v22 = vadd.f32 %v759_v9, %v249_v14  ;;  %v273_v23 = vadd.f32 %v759_v9, %v250_v15  ;;  %v274_v24 = vadd.f32 %v759_v9, %v251_v16  ;;  %v275_v25 = vadd.f32 %v759_v9, %v252_v17 }
  0x1b   : > { %v276_v26 = vadd.f32 %v759_v9, %v253_v18  ;;  %v277_v27 = vadd.f32 %v759_v9, %v254_v19  ;;  %v278_v28 = vadd.f32 %v759_v9, %v255_v20  ;;  %v279_v29 = vadd.f32 %v759_v9, %v256_v21 }
  0x1c   : > { %v288_v31 = vmax.f32 %v272_v22, 0.0  ;;  %v289_v32 = vmax.f32 %v273_v23, 0.0  ;;  %v290_v33 = vmax.f32 %v274_v24, 0.0  ;;  %v291_v34 = vmax.f32 %v275_v25, 0.0 }
  0x1d   : > { %v292_v36 = vmax.f32 %v276_v26, 0.0  ;;  %v293_v37 = vmax.f32 %v277_v27, 0.0  ;;  %v294_v38 = vmax.f32 %v278_v28, 0.0  ;;  %v295_v39 = vmax.f32 %v279_v29, 0.0 }
  0x1e   : > { %v556_v41 = vpack.c.bf16 %v289_v32, %v288_v31  ;;  %v561_v42 = vpack.c.bf16 %v291_v34, %v290_v33  ;;  %v539_v43 = vunpack.c.l.bf16 %v596_v30  ;;  %v540_v44 = vunpack.c.h.bf16 %v596_v30 }
  0x1f   : > { %v566_v46 = vpack.c.bf16 %v293_v37, %v292_v36  ;;  %v571_v47 = vpack.c.bf16 %v295_v39, %v294_v38  ;;  %v543_v48 = vunpack.c.l.bf16 %v597_v35  ;;  %v544_v49 = vunpack.c.h.bf16 %v597_v35 }
  0x20   : > { %557 = vst [vmem:[%s784_s5] sm:$0xff] %v556_v41   ;;  %600 = vst [vmem:[%s784_s5 + $0x8] sm:$0xff] %v561_v42   ;;  %v257_v50 = vmul.f32 %v539_v43, %v750_v0  ;;  %v258_v51 = vmul.f32 %v540_v44, %v750_v0  ;;  %v547_v52 = vunpack.c.l.bf16 %v598_v40  ;;  %v548_v53 = vunpack.c.h.bf16 %v598_v40 }
  0x21   : > { %601 = vst [vmem:[%s784_s5 + $0x10] sm:$0xff] %v566_v46   ;;  %602 = vst [vmem:[%s784_s5 + $0x18] sm:$0xff] %v571_v47   ;;  %v259_v54 = vmul.f32 %v543_v48, %v750_v0  ;;  %v260_v55 = vmul.f32 %v544_v49, %v750_v0  ;;  %v551_v56 = vunpack.c.l.bf16 %v599_v45  ;;  %v552_v57 = vunpack.c.h.bf16 %v599_v45 }
  0x22   : > { %v280_v58 = vadd.f32 %v759_v9, %v257_v50  ;;  %v281_v59 = vadd.f32 %v759_v9, %v258_v51  ;;  %v261_v60 = vmul.f32 %v547_v52, %v750_v0  ;;  %v262_v61 = vmul.f32 %v548_v53, %v750_v0 }
  0x23   : > { %v282_v62 = vadd.f32 %v759_v9, %v259_v54  ;;  %v283_v63 = vadd.f32 %v759_v9, %v260_v55  ;;  %v263_v1 = vmul.f32 %v551_v56, %v750_v0  ;;  %v264_v2 = vmul.f32 %v552_v57, %v750_v0 }
  0x24   : > { %v296_v3 = vmax.f32 %v280_v58, 0.0  ;;  %v297_v4 = vmax.f32 %v281_v59, 0.0  ;;  %v284_v5 = vadd.f32 %v759_v9, %v261_v60  ;;  %v285_v6 = vadd.f32 %v759_v9, %v262_v61 }
  0x25   : > { %v298_v7 = vmax.f32 %v282_v62, 0.0  ;;  %v299_v8 = vmax.f32 %v283_v63, 0.0  ;;  %v286_v10 = vadd.f32 %v759_v9, %v263_v1  ;;  %v287_v11 = vadd.f32 %v759_v9, %v264_v2 }
  0x26   : > { %v576_v12 = vpack.c.bf16 %v297_v4, %v296_v3  ;;  %v300_v13 = vmax.f32 %v284_v5, 0.0  ;;  %v301_v14 = vmax.f32 %v285_v6, 0.0 }
  0x27   : > { %v581_v15 = vpack.c.bf16 %v299_v8, %v298_v7  ;;  %v302_v0 = vmax.f32 %v286_v10, 0.0  ;;  %v303_v16 = vmax.f32 %v287_v11, 0.0 }
  0x28   : > { %603 = vst [vmem:[%s784_s5 + $0x20] sm:$0xff] %v576_v12   ;;  %v586_v17 = vpack.c.bf16 %v301_v14, %v300_v13 }
  0x29   : > { %604 = vst [vmem:[%s784_s5 + $0x28] sm:$0xff] %v581_v15   ;;  %v591_v18 = vpack.c.bf16 %v303_v16, %v302_v0 }
  0x2a   : > { %605 = vst [vmem:[%s784_s5 + $0x30] sm:$0xff] %v586_v17  }
  0x2b   : > { %606 = vst [vmem:[%s784_s5 + $0x38] sm:$0xff] %v591_v18  }
  0x2c PF: > { %s13_s16 = sadd.s32 1, %s685_s16   ;;  %s831_s12 = smov %s677_s14 }
  0x2d   : > { %p10_p7 = scmp.ge.s32.totalorder %s13_s16, 6   ;;  %s832_s13 = smov %s681_s15 }
  0x2e   : > { %s833_s14 = smov %s836_s17  ;;  %s834_s15 = smov %s840_s18 }
  0x2f   :  { %12 = sbr.rel (!%p10_p7) target bundleno = 3 (0x3), region = 62 }

// kernel: double_conv.7
= control target key start
LH: loop header
LB: loop body
LE: loop exit
PB: predicated region body
PF: predicated region fallthrough
CT: control target
= control target key end

     0   :  { %s564_s12 = smov 0   ;;  %s566_s13 = smov 0   ;;  %s689_s0 = inlined_call_operand.vmem [shape: bf16[2,256,128], index: 0, kind: input, shape index: {}]   ;;  %s690_s1 = inlined_call_operand.vmem [shape: f32[1,128], index: 1, kind: input, shape index: {}]   ;;  %s691_s2 = inlined_call_operand.vmem [shape: f32[1,128], index: 2, kind: input, shape index: {}]   ;;  %s692_s3 = inlined_call_operand.vmem [shape: f32[2,256,128], index: 3, kind: output, shape index: {}]  }
   0x1   :  { %s568_s14 = smov 0   ;;  %s570_s15 = smov 0  }
   0x2   :  { %s572_s16 = smov 0  }
   0x3 LB: > { %s22_s17 = sadd.s32 1, %s534_s14  ;;  %s25_s18 = sadd.s32 1, %s538_s15  ;;  %s542_s16 = sphi %s572_s16, %s13_s16   ;;  %s538_s15 = sphi %s570_s15, %s696_s15   ;;  %s534_s14 = sphi %s568_s14, %s695_s14   ;;  %s530_s13 = sphi %s566_s13, %s694_s13   ;;  %s526_s12 = sphi %s564_s12, %s693_s12  }
   0x4   : > { %p23_p0 = scmp.ge.s32.totalorder %s22_s17, 2  ;;  %p414_p1 = scmp.ge.s32.totalorder %s542_s16, 1 }
   0x5   : > { %p158_p2 = scmp.lt.s32.totalorder %s542_s16, 5 }
   0x6   : > { %s698_s17 = smov (%p23_p0, %s22_s17), 0  ;;  %s700_s18 = smov (!%p23_p0, %s25_s18), %s538_s15 }
   0x7   : > { %p159_p3 = pnand %p414_p1, %p158_p2  ;;  %p27_p4 = scmp.ge.s32.totalorder %s700_s18, 2 }
   0x8   : > { %s415_s19 = sshll.u32 (!%p159_p3), %s526_s12, 4  ;;  %p191_p5 = scmp.lt.s32.totalorder (!%p159_p3), %s530_s13, 1  ;;  %v605_v0 = vld [vmem:[%s690_s1] ss:$0 sm:$0xff] (!%p159_p3) }
   0x9   : > { %s702_s18 = smov (%p27_p4, %s700_s18), 0  ;;  %162 = sbr.rel (%p159_p3) target bundleno = 42 (0x2a), region = 32 }
   0xa   : > { %p193_p6 = scmp.lt.s32.totalorder (!%p159_p3), %s415_s19, 31  ;;  %v614_v9 = vld [vmem:[%s691_s2] ss:$0 sm:$0xff] (!%p159_p3) }
  0x10   : > { %s704_s13 = smov (!%p191_p5, %s530_s13), 1  ;;  %s706_s19 = smov (!%p193_p6, %s415_s19), 31 }
  0x11   : > { %s416_s20 = sshll.u32 %s704_s13, 5 }
  0x12   : > { %s594_s21 = sadd.s32 %s416_s20, %s706_s19 }
  0x13   : > { %s417_s22 = sshll.u32 %s594_s21, 2  ;;  %s420_s30 = sshll.u32 %s594_s21, 3 }
  0x14   : > { %s600_s25 = scalar_lea.vmem %s689_s0, %s417_s22  ;;  %s632_s6 = scalar_lea.vmem %s692_s3, %s420_s30 }
  0x15   : > { %v426_v1 = vld [vmem:[%s600_s25] sm:$0xff]   ;;  %v457_v2 = vld [vmem:[%s600_s25 + $0x8] sm:$0xff]   ;;  %v458_v3 = vld [vmem:[%s600_s25 + $0x10] sm:$0xff]  }
  0x16   : > { %v427_v4 = vunpack.c.l.bf16 %v426_v1  ;;  %v428_v5 = vunpack.c.h.bf16 %v426_v1  ;;  %v431_v6 = vunpack.c.l.bf16 %v457_v2  ;;  %v432_v7 = vunpack.c.h.bf16 %v457_v2  ;;  %v459_v8 = vld [vmem:[%s600_s25 + $0x18] sm:$0xff]   ;;  %v460_v30 = vld [vmem:[%s600_s25 + $0x20] sm:$0xff]   ;;  %v461_v31 = vld [vmem:[%s600_s25 + $0x28] sm:$0xff]  }
  0x17   : > { %v435_v10 = vunpack.c.l.bf16 %v458_v3  ;;  %v436_v11 = vunpack.c.h.bf16 %v458_v3  ;;  %v439_v12 = vunpack.c.l.bf16 %v459_v8  ;;  %v440_v13 = vunpack.c.h.bf16 %v459_v8  ;;  %v462_v36 = vld [vmem:[%s600_s25 + $0x30] sm:$0xff]   ;;  %v463_v37 = vld [vmem:[%s600_s25 + $0x38] sm:$0xff]  }
  0x18   : > { %v249_v14 = vmul.f32 %v427_v4, %v605_v0  ;;  %v250_v15 = vmul.f32 %v428_v5, %v605_v0  ;;  %v251_v16 = vmul.f32 %v431_v6, %v605_v0  ;;  %v252_v17 = vmul.f32 %v432_v7, %v605_v0 }
  0x19   : > { %v253_v18 = vmul.f32 %v435_v10, %v605_v0  ;;  %v254_v19 = vmul.f32 %v436_v11, %v605_v0  ;;  %v255_v20 = vmul.f32 %v439_v12, %v605_v0  ;;  %v256_v21 = vmul.f32 %v440_v13, %v605_v0 }
  0x1a   : > { %v272_v22 = vadd.f32 %v614_v9, %v249_v14  ;;  %v273_v23 = vadd.f32 %v614_v9, %v250_v15  ;;  %v274_v24 = vadd.f32 %v614_v9, %v251_v16  ;;  %v275_v25 = vadd.f32 %v614_v9, %v252_v17 }
  0x1b   : > { %v276_v26 = vadd.f32 %v614_v9, %v253_v18  ;;  %v277_v27 = vadd.f32 %v614_v9, %v254_v19  ;;  %v278_v28 = vadd.f32 %v614_v9, %v255_v20  ;;  %v279_v29 = vadd.f32 %v614_v9, %v256_v21 }
  0x1c   : > { %v288_v32 = vmax.f32 %v272_v22, 0.0  ;;  %v289_v33 = vmax.f32 %v273_v23, 0.0  ;;  %v290_v34 = vmax.f32 %v274_v24, 0.0  ;;  %v291_v35 = vmax.f32 %v275_v25, 0.0 }
  0x1d   : > { %v292_v38 = vmax.f32 %v276_v26, 0.0  ;;  %v293_v39 = vmax.f32 %v277_v27, 0.0  ;;  %v294_v40 = vmax.f32 %v278_v28, 0.0  ;;  %v295_v41 = vmax.f32 %v279_v29, 0.0 }
  0x1e   : > { %304 = vst [vmem:[%s632_s6] sm:$0xff] %v288_v32  ;;  %305 = vst [vmem:[%s632_s6 + $0x8] sm:$0xff] %v289_v33  ;;  %v443_v42 = vunpack.c.l.bf16 %v460_v30  ;;  %v444_v43 = vunpack.c.h.bf16 %v460_v30  ;;  %v447_v44 = vunpack.c.l.bf16 %v461_v31  ;;  %v448_v45 = vunpack.c.h.bf16 %v461_v31 }
  0x1f   : > { %306 = vst [vmem:[%s632_s6 + $0x10] sm:$0xff] %v290_v34  ;;  %307 = vst [vmem:[%s632_s6 + $0x18] sm:$0xff] %v291_v35  ;;  %v451_v46 = vunpack.c.l.bf16 %v462_v36  ;;  %v452_v47 = vunpack.c.h.bf16 %v462_v36  ;;  %v455_v48 = vunpack.c.l.bf16 %v463_v37  ;;  %v456_v49 = vunpack.c.h.bf16 %v463_v37 }
  0x20   : > { %308 = vst [vmem:[%s632_s6 + $0x20] sm:$0xff] %v292_v38  ;;  %309 = vst [vmem:[%s632_s6 + $0x28] sm:$0xff] %v293_v39  ;;  %v257_v50 = vmul.f32 %v443_v42, %v605_v0  ;;  %v258_v51 = vmul.f32 %v444_v43, %v605_v0  ;;  %v259_v52 = vmul.f32 %v447_v44, %v605_v0 }
  0x21   : > { %310 = vst [vmem:[%s632_s6 + $0x30] sm:$0xff] %v294_v40  ;;  %311 = vst [vmem:[%s632_s6 + $0x38] sm:$0xff] %v295_v41  ;;  %v260_v53 = vmul.f32 %v448_v45, %v605_v0  ;;  %v261_v54 = vmul.f32 %v451_v46, %v605_v0  ;;  %v262_v55 = vmul.f32 %v452_v47, %v605_v0 }
  0x22   : > { %v263_v56 = vmul.f32 %v455_v48, %v605_v0  ;;  %v264_v57 = vmul.f32 %v456_v49, %v605_v0  ;;  %v280_v58 = vadd.f32 %v614_v9, %v257_v50  ;;  %v281_v59 = vadd.f32 %v614_v9, %v258_v51 }
  0x23   : > { %v282_v60 = vadd.f32 %v614_v9, %v259_v52  ;;  %v283_v61 = vadd.f32 %v614_v9, %v260_v53  ;;  %v284_v62 = vadd.f32 %v614_v9, %v261_v54  ;;  %v285_v63 = vadd.f32 %v614_v9, %v262_v55 }
  0x24   : > { %v286_v0 = vadd.f32 %v614_v9, %v263_v56  ;;  %v287_v1 = vadd.f32 %v614_v9, %v264_v57  ;;  %v296_v2 = vmax.f32 %v280_v58, 0.0  ;;  %v297_v3 = vmax.f32 %v281_v59, 0.0 }
  0x25   : > { %v298_v4 = vmax.f32 %v282_v60, 0.0  ;;  %v299_v5 = vmax.f32 %v283_v61, 0.0  ;;  %v300_v6 = vmax.f32 %v284_v62, 0.0  ;;  %v301_v7 = vmax.f32 %v285_v63, 0.0 }
  0x26   : > { %v302_v8 = vmax.f32 %v286_v0, 0.0  ;;  %v303_v10 = vmax.f32 %v287_v1, 0.0  ;;  %312 = vst [vmem:[%s632_s6 + $0x40] sm:$0xff] %v296_v2  ;;  %313 = vst [vmem:[%s632_s6 + $0x48] sm:$0xff] %v297_v3 }
  0x27   : > { %314 = vst [vmem:[%s632_s6 + $0x50] sm:$0xff] %v298_v4  ;;  %315 = vst [vmem:[%s632_s6 + $0x58] sm:$0xff] %v299_v5 }
  0x28   : > { %316 = vst [vmem:[%s632_s6 + $0x60] sm:$0xff] %v300_v6  ;;  %317 = vst [vmem:[%s632_s6 + $0x68] sm:$0xff] %v301_v7 }
  0x29   : > { %318 = vst [vmem:[%s632_s6 + $0x70] sm:$0xff] %v302_v8  ;;  %319 = vst [vmem:[%s632_s6 + $0x78] sm:$0xff] %v303_v10 }
  0x2a PF: > { %s13_s16 = sadd.s32 1, %s542_s16   ;;  %s693_s12 = smov %s534_s14 }
  0x2b   : > { %p10_p7 = scmp.ge.s32.totalorder %s13_s16, 6   ;;  %s694_s13 = smov %s538_s15 }
  0x2c   : > { %s695_s14 = smov %s698_s17  ;;  %s696_s15 = smov %s702_s18 }
  0x2d   :  { %12 = sbr.rel (!%p10_p7) target bundleno = 3 (0x3), region = 62 }

// kernel: double_conv.4
= control target key start
LH: loop header
LB: loop body
LE: loop exit
PB: predicated region body
PF: predicated region fallthrough
CT: control target
= control target key end

     0   :  { %s3995_s21 = smov 0   ;;  %s3997_s22 = smov 0   ;;  %s4793_s0 = inlined_call_operand.vmem [shape: bf16[2,16,18,128], index: 0, kind: input, shape index: {}, may-alias: {0,1,2}]   ;;  %s4794_s1 = inlined_call_operand.vmem [shape: bf16[2,16,18,128], index: 1, kind: input, shape index: {}, may-alias: {0,1,2}]   ;;  %s4795_s2 = inlined_call_operand.vmem [shape: bf16[2,16,18,128], index: 2, kind: input, shape index: {}, may-alias: {0,1,2}]   ;;  %s4796_s3 = inlined_call_operand.vmem [shape: bf16[9,128,128], index: 3, kind: input, shape index: {}]   ;;  %s4797_s4 = inlined_call_operand.vmem [shape: f32[1,128], index: 4, kind: input, shape index: {}]   ;;  %s4798_s5 = inlined_call_operand.vmem [shape: bf16[2,256,128], index: 5, kind: output, shape index: {0}]   ;;  %s4799_s6 = inlined_call_operand.vmem [shape: f32[2,2,2,128], index: 6, kind: output, shape index: {1}]  }
   0x1   :  { %s3999_s23 = smov 0   ;;  %s4001_s24 = smov 0  }
   0x2   :  { %s4003_s25 = smov 0  }
   0x3 LB: > { %s26_s26 = sadd.s32 1, %s3950_s23  ;;  %s29_s27 = sadd.s32 1, %s3954_s24  ;;  %s3958_s25 = sphi %s4003_s25, %s17_s25   ;;  %s3954_s24 = sphi %s4001_s24, %s4810_s24   ;;  %s3950_s23 = sphi %s3999_s23, %s4809_s23   ;;  %s3946_s22 = sphi %s3997_s22, %s4808_s22   ;;  %s3942_s21 = sphi %s3995_s21, %s4807_s21  }
   0x4   : > { %p27_p0 = scmp.ge.s32.totalorder %s26_s26, 2  ;;  %p2875_p1 = scmp.ge.s32.totalorder %s3958_s25, 1 }
   0x5   : > { %p303_p2 = scmp.lt.s32.totalorder %s3958_s25, 5 }
   0x6   : > { %s4812_s26 = smov (%p27_p0, %s26_s26), 0  ;;  %s4814_s27 = smov (!%p27_p0, %s29_s27), %s3954_s24 }
   0x7   : > { %p304_p3 = pnand %p2875_p1, %p303_p2  ;;  %p31_p4 = scmp.ge.s32.totalorder %s4814_s27, 2 }
   0x8   : > { %v3840_v0 = vld [vmem:[%s4796_s3 + $0x40] sm:$0xff] (!%p304_p3)   ;;  %s4033_s30 = sshll.u32 (!%p304_p3), %s3942_s21, 3  ;;  %v3842_v2 = vld [vmem:[%s4796_s3 + $0x48] sm:$0xff] (!%p304_p3)   ;;  %p380_p6 = scmp.lt.s32.totalorder (!%p304_p3), %s3946_s22, 1  ;;  %v3844_v4 = vld [vmem:[%s4796_s3 + $0x50] sm:$0xff] (!%p304_p3)   ;;  %vm1090_vm4 = vcmask (!%p304_p3), 1042432  }
   0x9   : > { %s4816_s27 = smov (%p31_p4, %s4814_s27), 0  ;;  %307 = sbr.rel (%p304_p3) target bundleno = 444 (0x1bc), region = 40 }
   0xa   : > { %v3841_v1 = vld [vmem:[%s4796_s3 + $0x100] sm:$0xff] (!%p304_p3)   ;;  %s2877_s9 = sadd.s32 (!%p304_p3), 4294967295, %s4033_s30  ;;  %3364 = vmatprep.subr.bf16.mxu1 (!%p304_p3), %v3840_v0  ;;  %v3843_v3 = vld [vmem:[%s4796_s3 + $0x108] sm:$0xff] (!%p304_p3)   ;;  %v3845_v5 = vld [vmem:[%s4796_s3 + $0x110] sm:$0xff] (!%p304_p3)   ;;  %p396_p8 = scmp.lt.s32.totalorder (!%p304_p3), %s4033_s30, 15  ;;  %vm1091_vm5 = vcmask (!%p304_p3), 1046532  }
   0xb   : > { %p378_p5 = scmp.gt.s32.totalorder (!%p304_p3), %s2877_s9, 0  ;;  %3492 = vmatprep.subr.bf16.mxu0 (!%p304_p3), %v3841_v1  ;;  %3365 = vmatpush3.bf16.msra.mxu1 (!%p304_p3), %v3840_v0  ;;  %p2878_p7 = scmp.lt.s32.totalorder (!%p304_p3), %s2877_s9, 15  ;;  %v3846_v6 = vld [vmem:[%s4796_s3 + $0x58] sm:$0xff] (!%p304_p3)   ;;  %v3848_v8 = vld [vmem:[%s4796_s3 + $0x60] sm:$0xff] (!%p304_p3)   ;;  %v3850_v10 = vld [vmem:[%s4796_s3 + $0x68] sm:$0xff] (!%p304_p3)   ;;  %vm2680_vm8 = vcmask (!%p304_p3), 1040384  }
   0xc   : > { %3493 = vmatpush3.bf16.msra.mxu0 (!%p304_p3), %v3841_v1  ;;  %3366 = vmatprep.subr.bf16.mxu1 (!%p304_p3), %v3842_v2  ;;  %v3847_v7 = vld [vmem:[%s4796_s3 + $0x118] sm:$0xff] (!%p304_p3)   ;;  %v3849_v9 = vld [vmem:[%s4796_s3 + $0x120] sm:$0xff] (!%p304_p3)   ;;  %v3851_v11 = vld [vmem:[%s4796_s3 + $0x128] sm:$0xff] (!%p304_p3)   ;;  %p440_p9 = scmp.eq.s32.totalorder (!%p304_p3), %s3942_s21, 0  ;;  %vm500_vm0 = vsmask.f32 (!%p304_p3), 3328 }
   0xd   : > { %3494 = vmatprep.subr.bf16.mxu0 (!%p304_p3), %v3843_v3  ;;  %v3852_v12 = vld [vmem:[%s4796_s3 + $0x70] sm:$0xff] (!%p304_p3)   ;;  %v3854_v25 = vld [vmem:[%s4796_s3 + $0x78] sm:$0xff] (!%p304_p3)   ;;  %vm501_vm1 = vsmask.f32 (!%p304_p3), 7440  ;;  %v4141_v47 = vld [vmem:[%s4796_s3] sm:$0xff] (!%p304_p3)   ;;  %p450_p11 = scmp.eq.s32.totalorder (!%p304_p3), %s3942_s21, 1 }
   0xe   : > { %v3853_v21 = vld [vmem:[%s4796_s3 + $0x130] sm:$0xff] (!%p304_p3)   ;;  %v3855_v33 = vld [vmem:[%s4796_s3 + $0x138] sm:$0xff] (!%p304_p3)   ;;  %vm4129_vm3 = vmor (!%p304_p3), %vm500_vm0, %vm501_vm1  ;;  %p433_p13 = scmp.lt.s32.totalorder (!%p304_p3), %s3942_s21, 1 }
   0xf   : > { %3367 = vmatpush3.bf16.msra.mxu1 (!%p304_p3), %v3842_v2  ;;  %v4152_v57 = vld [vmem:[%s4796_s3 + $0x140] sm:$0xff] (!%p304_p3)   ;;  %vm4332_vm6 = vmor (!%p304_p3), %vm1090_vm4, %vm1091_vm5 }
  0x10   : > { %s379_s16 = scalar_select %p378_p5, %s2877_s9, 0  ;;  %3495 = vmatpush3.bf16.msra.mxu0 %v3843_v3  ;;  %3368 = vmatprep.subr.bf16.mxu1 %v3844_v4 }
  0x11   : > { %s4818_s22 = smov (!%p380_p6, %s3946_s22), 1  ;;  %3496 = vmatprep.subr.bf16.mxu0 %v3845_v5 }
  0x12   : > { %s4056_s19 = smul.u32 48, %s4818_s22  ;;  %s4820_s16 = smov (!%p2878_p7, %s379_s16), 15 }
  0x13   : > { %s3796_s8 = smul.u32 3, %s4820_s16  ;;  %3369 = vmatpush3.bf16.msra.mxu1 %v3844_v4  ;;  %s2894_s14 = sshll.u32 %s4818_s22, 1 }
  0x14   : > { %s397_s9 = scalar_select %p396_p8, %s4033_s30, 15  ;;  %3497 = vmatpush3.bf16.msra.mxu0 %v3845_v5  ;;  %3370 = vmatprep.subr.bf16.mxu1 %v3846_v6 }
  0x15   : > { %s386_s12 = sadd.s32 %s4056_s19, %s3796_s8  ;;  %3498 = vmatprep.subr.bf16.mxu0 %v3847_v7 }
  0x16   : > { %s2883_s15 = sshll.u32 %s386_s12, 2  ;;  %s3798_s17 = smul.u32 3, %s397_s9 }
  0x17   : > { %3371 = vmatpush3.bf16.msra.mxu1 %v3846_v6  ;;  %s388_s29 = scalar_lea.vmem %s4793_s0, %s2883_s15  ;;  %s405_s12 = sadd.s32 8, %s4033_s30 }
  0x18   : > { %3499 = vmatpush3.bf16.msra.mxu0 %v3847_v7  ;;  %3372 = vmatprep.subr.bf16.mxu1 %v3848_v8  ;;  %s400_s7 = sadd.s32 %s3798_s17, %s4056_s19  ;;  %v441_v13 = vld [vmem:[%s388_s29] sm:$0xf]  ;;  %v442_v14 = vld [vmem:[%s388_s29 + $0x4] sm:$0xf]  ;;  %v443_v15 = vld [vmem:[%s388_s29 + $0x8] sm:$0x1] }
  0x19   : > { %3500 = vmatprep.subr.bf16.mxu0 %v3849_v9  ;;  %s2885_s11 = sshll.u32 %s400_s7, 2  ;;  %p4537_p10 = scmp.lt.s32.totalorder %s405_s12, 15 }
  0x1a   : > { %s4089_s16 = scalar_lea.vmem %s4794_s1, %s2885_s11 }
  0x1b   : > { %3373 = vmatpush3.bf16.msra.mxu1 %v3848_v8  ;;  %v4093_v16 = vld [vmem:[%s4089_s16] sm:$0xf]  ;;  %v4096_v17 = vld [vmem:[%s4089_s16 + $0x4] sm:$0xf]  ;;  %s444_s15 = scalar_select %p440_p9, 1, 0 }
  0x1c   : > { %3501 = vmatpush3.bf16.msra.mxu0 %v3849_v9  ;;  %3374 = vmatprep.subr.bf16.mxu1 %v3850_v10  ;;  %v4099_v18 = vld [vmem:[%s4089_s16 + $0x8] sm:$0x1]  ;;  %v528_v19 = vshrl.u32 %v4093_v16, 16  ;;  %v531_v20 = vshll.u32 %v4093_v16, 16  ;;  %v537_v22 = vshll.u32 %v4096_v17, 16  ;;  %v541_v23 = vshrl.u32 %v4096_v17, 16 }
  0x1d   : > { %3502 = vmatprep.subr.bf16.mxu0 %v3851_v11  ;;  %v547_v24 = vshll.u32 %v4099_v18, 16  ;;  %v445_v26 = vstv %s444_s15  ;;  %v4113_v32 = vld [vmem:[%s4089_s16 + $0xc] sm:$0xf]  ;;  %v4125_v38 = vld [vmem:[%s4089_s16 + $0x10] sm:$0xf]  ;;  %s4822_s12 = smov (!%p4537_p10, %s405_s12), 15 }
  0x1e   : > { %v530_v27 = vrot.slane %v528_v19, 4  ;;  %v533_v28 = vrot.slane %v531_v20, 5  ;;  %vm446_vm2 = vcmp.eq.s32.totalorder %v445_v26, 1  ;;  %v539_v29 = vrot.slane %v537_v22, 5  ;;  %v4144_v48 = vld [vmem:[%s4089_s16 + $0x14] sm:$0x1] }
  0x1f   : > { %3375 = vmatpush3.bf16.msra.mxu1 %v3850_v10  ;;  %v543_v30 = vrot.slane %v541_v23, 4  ;;  %v549_v31 = vrot.slane %v547_v24, 5  ;;  %v4118_v34 = vsel %vm446_vm2, 0, %v441_v13  ;;  %v4120_v35 = vsel %vm446_vm2, 0, %v442_v14  ;;  %v4157_v62 = vld [vmem:[%s4089_s16 + $0x18] sm:$0xf] }
  0x20   : > { %3503 = vmatpush3.bf16.msra.mxu0 %v3851_v11  ;;  %3376 = vmatprep.subr.bf16.mxu1 %v3852_v12  ;;  %v4122_v36 = vsel %vm446_vm2, 0, %v443_v15  ;;  %v534_v37 = vor.u32 %v533_v28, %v530_v27  ;;  %v504_v40 = vshrl.u32 %v4118_v34, 16  ;;  %v507_v41 = vshll.u32 %v4118_v34, 16  ;;  %v4164_v3 = vld [vmem:[%s4089_s16 + $0x1c] sm:$0xf]  ;;  %v3858_v22 = vld [vmem:[%s4796_s3 + $0x8] sm:$0xff]  }
  0x21   : > { %3504 = vmatprep.subr.bf16.mxu0 %v3853_v21  ;;  %v513_v42 = vshll.u32 %v4120_v35, 16  ;;  %v517_v43 = vshrl.u32 %v4120_v35, 16  ;;  %v523_v44 = vshll.u32 %v4122_v36, 16  ;;  %v544_v46 = vor.u32 %v543_v30, %v539_v29  ;;  %v4167_v8 = vld [vmem:[%s4089_s16 + $0x20] sm:$0x1]  ;;  %s4824_s12 = smov (!%p4537_p10, %s4822_s12), 15 }
  0x22   : > { %v535_v45 = vrot.slane %v534_v37, 4  ;;  %v506_v49 = vrot.slane %v504_v40, 4  ;;  %v509_v50 = vrot.slane %v507_v41, 5  ;;  %v552_v56 = vshrl.u32 %v4113_v32, 16  ;;  %v4177_v19 = vld [vmem:[%s4089_s16 + $0x24] sm:$0xf] }
  0x23   : > { %3377 = vmatpush3.bf16.msra.mxu1 %v3852_v12  ;;  %v515_v51 = vrot.slane %v513_v42, 5  ;;  %v519_v52 = vrot.slane %v517_v43, 4  ;;  %v525_v53 = vrot.slane %v523_v44, 5  ;;  %v545_v55 = vrot.slane %v544_v46, 4  ;;  %v4190_v30 = vld [vmem:[%s4089_s16 + $0x2c] sm:$0x1] }
  0x24   : > { %3505 = vmatpush3.bf16.msra.mxu0 %v3853_v21  ;;  %3378 = vmatprep.subr.bf16.mxu1 %v3854_v25  ;;  %v540_v54 = vsel %vm4129_vm3, %v535_v45, %v539_v29  ;;  %v510_v58 = vor.u32 %v509_v50, %v506_v49  ;;  %v555_v60 = vshll.u32 %v4113_v32, 16  ;;  %v561_v61 = vshll.u32 %v4125_v38, 16  ;;  %v3859_v42 = vld [vmem:[%s4796_s3 + $0x148] sm:$0xff]   ;;  %v4201_v45 = vld [vmem:[%s4796_s3 + $0x10] sm:$0xff]   ;;  %s3799_s10 = smul.u32 3, %s4824_s12 }
  0x25   : > { %3506 = vmatprep.subr.bf16.mxu0 %v3855_v33  ;;  %v520_v59 = vor.u32 %v519_v52, %v515_v51  ;;  %v550_v63 = vsel %vm4129_vm3, %v545_v55, %v549_v31  ;;  %v554_v0 = vrot.slane %v552_v56, 4  ;;  %v565_v1 = vshrl.u32 %v4125_v38, 16 }
  0x26   : > { %v571_v2 = vshll.u32 %v4144_v48, 16  ;;  %v511_v4 = vrot.slane %v510_v58, 4  ;;  %v2913_v6 = vcombine.low %v540_v54, %v550_v63  ;;  %v557_v7 = vrot.slane %v555_v60, 5  ;;  %v4212_v58 = vld [vmem:[%s4089_s16 + $0x30] sm:$0xf]  ;;  %s414_s30 = sadd.s32 %s3799_s10, %s4056_s19  ;;  %s2892_s19 = sshll.u32 %s4818_s22, 5 }
  0x27   : > { %3379 = vmatpush3.bf16.msra.mxu1 %v3854_v25  ;;  %v521_v5 = vrot.slane %v520_v59, 4  ;;  %v563_v9 = vrot.slane %v561_v61, 5  ;;  %v567_v10 = vrot.slane %v565_v1, 4  ;;  %v576_v15 = vshrl.u32 %v4157_v62, 16  ;;  %v4185_v25 = vld [vmem:[%s4089_s16 + $0x28] sm:$0xf] }
  0x28   : > { %3507 = vmatpush3.bf16.msra.mxu0 %v3855_v33  ;;  %3396 = vmatprep.subr.bf16.mxu1 %v4141_v47  ;;  %v573_v11 = vrot.slane %v571_v2, 5  ;;  %v516_v12 = vsel %vm4129_vm3, %v511_v4, %v515_v51  ;;  %v558_v14 = vor.u32 %v557_v7, %v554_v0  ;;  %v579_v23 = vshll.u32 %v4157_v62, 16  ;;  %v4216_v63 = vld [vmem:[%s4089_s16 + $0x34] sm:$0xf]  ;;  %v4222_v4 = vld [vmem:[%s4089_s16 + $0x38] sm:$0x1] }
  0x29   : > { %v526_v13 = vsel %vm4129_vm3, %v521_v5, %v525_v53  ;;  %3508 = vmatprep.mubr.bf16.mxu0 %v2913_v6  ;;  %3524 = vmatprep.subr.bf16.mxu0 %v4152_v57  ;;  %v568_v21 = vor.u32 %v567_v10, %v563_v9  ;;  %v585_v24 = vshll.u32 %v4164_v3, 16  ;;  %v578_v27 = vrot.slane %v576_v15, 4  ;;  %v4236_v15 = vld [vmem:[%s4089_s16 + $0x3c] sm:$0xf]  ;;  %s2890_s20 = sshll.u32 %s414_s30, 2 }
  0x2a   : > { %v2912_v20 = vcombine.low %v516_v12, %v526_v13  ;;  %v559_v26 = vrot.slane %v558_v14, 4  ;;  %v589_v28 = vshrl.u32 %v4164_v3, 16  ;;  %v595_v29 = vshll.u32 %v4167_v8, 16  ;;  %s4593_s11 = scalar_lea.vmem %s4795_s2, %s2890_s20  ;;  %s2891_s20 = sshll.u32 %s3942_s21, 4 }
  0x2b   : > { %v569_v31 = vrot.slane %v568_v21, 4  ;;  %v581_v33 = vrot.slane %v579_v23, 5  ;;  %v587_v37 = vrot.slane %v585_v24, 5  ;;  %v600_v40 = vshrl.u32 %v4177_v19, 16  ;;  %v3862_v21 = vld [vmem:[%s4796_s3 + $0x18] sm:$0xff]   ;;  %p424_p12 = scmp.lt.s32.totalorder %s2891_s20, 31 }
  0x2c   : > { %3380 = vmatprep.mubr.bf16.mxu1 %v2912_v20  ;;  %v564_v41 = vsel %vm4129_vm3, %v559_v26, %v563_v9  ;;  %v591_v43 = vrot.slane %v589_v28, 4  ;;  %v597_v44 = vrot.slane %v595_v29, 5  ;;  %v603_v46 = vshll.u32 %v4177_v19, 16  ;;  %v3861_v9 = vld [vmem:[%s4796_s3 + $0x150] sm:$0xff]   ;;  %v4246_v26 = vld [vmem:[%s4089_s16 + $0x40] sm:$0xf] }
  0x2d   : > { %3381 = vmatmul.mubr.bf16.vlgmr.msra.gmra.mrb[0].mxu1 %v2913_v6  ;;  %v574_v49 = vsel %vm4129_vm3, %v569_v31, %v573_v11  ;;  %v582_v50 = vor.u32 %v581_v33, %v578_v27  ;;  %v602_v51 = vrot.slane %v600_v40, 4  ;;  %v609_v52 = vshll.u32 %v4185_v25, 16  ;;  %v4251_v31 = vld [vmem:[%s4089_s16 + $0x44] sm:$0x1]  ;;  %s4826_s20 = smov (!%p424_p12, %s2891_s20), 31  ;;  %s4828_s21 = smov (!%p433_p13, %s3942_s21), 1 }
  0x2e   : > { %3397 = vmatpush3.bf16.msra.mxu1 %v4141_v47  ;;  %v4208_v53 = vcombine.low %v564_v41, %v574_v49  ;;  %v592_v54 = vor.u32 %v591_v43, %v587_v37  ;;  %v605_v55 = vrot.slane %v603_v46, 5  ;;  %v613_v56 = vshrl.u32 %v4185_v25, 16  ;;  %v3864_v49 = vld [vmem:[%s4796_s3 + $0x20] sm:$0xff]   ;;  %s427_s28 = sadd.s32 %s2892_s19, %s4826_s20  ;;  %s436_s30 = sadd.s32 %s2894_s14, %s4828_s21 }
  0x2f   : > { %3398 = vmatprep.subr.bf16.mxu1 %v3858_v22  ;;  %v583_v59 = vrot.slane %v582_v50, 4  ;;  %v611_v60 = vrot.slane %v609_v52, 5  ;;  %v619_v61 = vshll.u32 %v4190_v30, 16  ;;  %v624_v47 = vshrl.u32 %v4212_v58, 16  ;;  %s2893_s8 = sshll.u32 %s427_s28, 2 }
  0x30   : > { %3509 = vmatmul.mubr.bf16.vlgmr.msra.gmra.mrb[0].mxu0 %v4208_v53  ;;  %3384 = vmatprep.mubr.bf16.mxu1 %v4208_v53  ;;  %v593_v0 = vrot.slane %v592_v54, 4  ;;  %v606_v1 = vor.u32 %v605_v55, %v602_v51  ;;  %v615_v2 = vrot.slane %v613_v56, 4  ;;  %v627_v5 = vshll.u32 %v4212_v58, 16  ;;  %s4721_s13 = scalar_lea.vmem %s4798_s5, %s2893_s8 }
  0x31   : > { %3525 = vmatpush3.bf16.msra.mxu0 %v4152_v57  ;;  %v588_v6 = vsel %vm4129_vm3, %v583_v59, %v587_v37  ;;  %v621_v7 = vrot.slane %v619_v61, 5  ;;  %v626_v10 = vrot.slane %v624_v47, 4  ;;  %v633_v11 = vshll.u32 %v4216_v63, 16  ;;  %v3863_v37 = vld [vmem:[%s4796_s3 + $0x158] sm:$0xff]   ;;  %v4272_v61 = vld [vmem:[%s4089_s16 + $0x48] sm:$0xf] }
  0x32   : > { %3399 = vmatpush3.bf16.msra.mxu1 %v3858_v22  ;;  %3526 = vmatprep.subr.bf16.mxu0 %v3859_v42  ;;  %v598_v12 = vsel %vm4129_vm3, %v593_v0, %v597_v44  ;;  %v607_v57 = vrot.slane %v606_v1, 4  ;;  %v616_v13 = vor.u32 %v615_v2, %v611_v60  ;;  %v629_v14 = vrot.slane %v627_v5, 5  ;;  %v4282_v2 = vld [vmem:[%s4089_s16 + $0x50] sm:$0x1] }
  0x33   : > { %3400 = vmatprep.subr.bf16.mxu1 %v4201_v45  ;;  %v4238_v20 = vcombine.low %v588_v6, %v598_v12  ;;  %v635_v22 = vrot.slane %v633_v11, 5  ;;  %v637_v23 = vshrl.u32 %v4216_v63, 16  ;;  %v643_v24 = vshll.u32 %v4222_v4, 16 }
  0x34   : > { %v612_v27 = vsel %vm4129_vm3, %v607_v57, %v611_v60  ;;  %v617_v28 = vrot.slane %v616_v13, 4  ;;  %v630_v29 = vor.u32 %v629_v14, %v626_v10  ;;  %v648_v33 = vshrl.u32 %v4236_v15, 16  ;;  %v3865_v13 = vld [vmem:[%s4796_s3 + $0x160] sm:$0xff]  }
  0x35   : > { %3527 = vmatpush3.bf16.msra.mxu0 %v3859_v42  ;;  %3512 = vmatprep.mubr.bf16.mxu0 %v4238_v20  ;;  %v639_v40 = vrot.slane %v637_v23, 4  ;;  %v645_v41 = vrot.slane %v643_v24, 5  ;;  %v651_v43 = vshll.u32 %v4236_v15, 16  ;;  %v657_v44 = vshll.u32 %v4246_v26, 16 }
  0x36   : > { %3385 = vmatmul.mubr.bf16.gmra.mrb[4].mxu1 %v4238_v20  ;;  %v622_v46 = vsel %vm4129_vm3, %v617_v28, %v621_v7  ;;  %3528 = vmatprep.subr.bf16.mxu0 %v3861_v9  ;;  %v631_v42 = vrot.slane %v630_v29, 4  ;;  %v650_v50 = vrot.slane %v648_v33, 4  ;;  %v661_v51 = vshrl.u32 %v4246_v26, 16  ;;  %v4299_v28 = vld [vmem:[%s4089_s16 + $0x54] sm:$0xf]  ;;  %v3867_v33 = vld [vmem:[%s4796_s3 + $0x168] sm:$0xff]  }
  0x37   : > { %v4267_v52 = vcombine.low %v612_v27, %v622_v46  ;;  %3401 = vmatpush3.bf16.msra.mxu1 %v4201_v45  ;;  %v640_v54 = vor.u32 %v639_v40, %v635_v22  ;;  %v653_v55 = vrot.slane %v651_v43, 5  ;;  %v659_v56 = vrot.slane %v657_v44, 5  ;;  %v4279_v45 = vld [vmem:[%s4089_s16 + $0x4c] sm:$0xf]  ;;  %v4308_v43 = vld [vmem:[%s4089_s16 + $0x58] sm:$0xf] }
  0x38   : > { %3402 = vmatprep.subr.bf16.mxu1 %v3862_v21  ;;  %v663_v59 = vrot.slane %v661_v51, 4  ;;  %v667_v60 = vshll.u32 %v4251_v31, 16  ;;  %v636_v47 = vsel %vm4129_vm3, %v631_v42, %v635_v22  ;;  %v672_v5 = vshrl.u32 %v4272_v61, 16  ;;  %v4311_v44 = vld [vmem:[%s4089_s16 + $0x5c] sm:$0x1] }
  0x39   : > { %3513 = vmatmul.mubr.bf16.gmra.mrb[4].mxu0 %v4267_v52  ;;  %3388 = vmatprep.mubr.bf16.mxu1 %v4267_v52  ;;  %v641_v0 = vrot.slane %v640_v54, 4  ;;  %v654_v1 = vor.u32 %v653_v55, %v650_v50  ;;  %v675_v10 = vshll.u32 %v4272_v61, 16  ;;  %v681_v11 = vshll.u32 %v4279_v45, 16  ;;  %s454_s16 = scalar_select %p450_p11, 1, 0 }
  0x3a   : > { %3529 = vmatpush3.bf16.msra.mxu0 %v3861_v9  ;;  %v664_v6 = vor.u32 %v663_v59, %v659_v56  ;;  %v669_v7 = vrot.slane %v667_v60, 5  ;;  %v674_v9 = vrot.slane %v672_v5, 4  ;;  %v685_v14 = vshrl.u32 %v4279_v45, 16 }
  0x3b   : > { %3530 = vmatprep.subr.bf16.mxu0 %v3863_v37  ;;  %3403 = vmatpush3.bf16.msra.mxu1 %v3862_v21  ;;  %v646_v12 = vsel %vm4129_vm3, %v641_v0, %v645_v41  ;;  %v655_v57 = vrot.slane %v654_v1, 4  ;;  %v3866_v21 = vld [vmem:[%s4796_s3 + $0x28] sm:$0xff]   ;;  %v677_v24 = vrot.slane %v675_v10, 5  ;;  %v683_v27 = vrot.slane %v681_v11, 5 }
  0x3c   : > { %v4293_v22 = vcombine.low %v636_v47, %v646_v12  ;;  %3404 = vmatprep.subr.bf16.mxu1 %v3864_v49  ;;  %v665_v23 = vrot.slane %v664_v6, 4  ;;  %v687_v40 = vrot.slane %v685_v14, 4  ;;  %v691_v41 = vshll.u32 %v4282_v2, 16 }
  0x3d   : > { %v660_v29 = vsel %vm4129_vm3, %v655_v57, %v659_v56  ;;  %v678_v42 = vor.u32 %v677_v24, %v674_v9  ;;  %v1544_v50 = vshrl.u32 %v4299_v28, 16  ;;  %v1547_v51 = vshll.u32 %v4299_v28, 16 }
  0x3e   : > { %3531 = vmatpush3.bf16.msra.mxu0 %v3863_v37  ;;  %3516 = vmatprep.mubr.bf16.mxu0 %v4293_v22  ;;  %v670_v46 = vsel %vm4129_vm3, %v665_v23, %v669_v7  ;;  %v688_v55 = vor.u32 %v687_v40, %v683_v27  ;;  %v693_v56 = vrot.slane %v691_v41, 5  ;;  %v3868_v37 = vld [vmem:[%s4796_s3 + $0x30] sm:$0xff]   ;;  %v1553_v59 = vshll.u32 %v4308_v43, 16 }
  0x3f   : > { %3389 = vmatmul.mubr.bf16.gmra.mrb[8].mxu1 %v4293_v22  ;;  %v4319_v54 = vcombine.low %v660_v29, %v670_v46  ;;  %3532 = vmatprep.subr.bf16.mxu0 %v3865_v13  ;;  %v679_v60 = vrot.slane %v678_v42, 4  ;;  %v1546_v47 = vrot.slane %v1544_v50, 4  ;;  %v1549_v0 = vrot.slane %v1547_v51, 5  ;;  %v3870_v46 = vld [vmem:[%s4796_s3 + $0x38] sm:$0xff]  }
  0x40   : > { %3405 = vmatpush3.bf16.msra.mxu1 %v3864_v49  ;;  %v1557_v1 = vshrl.u32 %v4308_v43, 16  ;;  %v689_v5 = vrot.slane %v688_v55, 4  ;;  %v1555_v6 = vrot.slane %v1553_v59, 5  ;;  %v1563_v7 = vshll.u32 %v4311_v44, 16 }
  0x41   : > { %3517 = vmatmul.mubr.bf16.gmra.mrb[8].mxu0 %v4319_v54  ;;  %3406 = vmatprep.subr.bf16.mxu1 %v3866_v21  ;;  %v684_v10 = vsel %vm4129_vm3, %v679_v60, %v683_v27  ;;  %v1550_v49 = vor.u32 %v1549_v0, %v1546_v47  ;;  %v2945_v57 = vrot.slane %v4093_v16, 9  ;;  %v2928_v14 = vcombine.low %v4118_v34, %v4120_v35 }
  0x42   : > { %3533 = vmatpush3.bf16.msra.mxu0 %v3865_v13  ;;  %3392 = vmatprep.mubr.bf16.mxu1 %v4319_v54  ;;  %v1559_v11 = vrot.slane %v1557_v1, 4  ;;  %v694_v9 = vsel %vm4129_vm3, %v689_v5, %v693_v56  ;;  %v3869_v13 = vld [vmem:[%s4796_s3 + $0x170] sm:$0xff]   ;;  %v1102_v23 = vrot.slane %v4096_v17, 5  ;;  %v1105_v24 = vrot.slane %v4099_v18, 5  ;;  %v3871_v56 = vld [vmem:[%s4796_s3 + $0x178] sm:$0xff]   ;;  %v3873_v5 = vld [vmem:[%s4796_s3 + $0x80] sm:$0xff]  }
  0x43   : > { %3534 = vmatprep.subr.bf16.mxu0 %v3867_v33  ;;  %v4346_v27 = vcombine.low %v684_v10, %v694_v9  ;;  %v1551_v29 = vrot.slane %v1550_v49, 4  ;;  %v1565_v41 = vrot.slane %v1563_v7, 5  ;;  %v1109_v51 = vrot.slane %v4125_v38, 5  ;;  %v3874_v49 = vld [vmem:[%s4796_s3 + $0x180] sm:$0xff]  }
  0x44   : > { %3407 = vmatpush3.bf16.msra.mxu1 %v3866_v21  ;;  %v1560_v40 = vor.u32 %v1559_v11, %v1555_v6  ;;  %v1103_v42 = vsel %vm4332_vm6, %v2945_v57, %v1102_v23  ;;  %v1104_v50 = vrot.slane %v1102_v23, 4  ;;  %v1112_v55 = vrot.slane %v4144_v48, 5  ;;  %v3876_v23 = vld [vmem:[%s4796_s3 + $0x188] sm:$0xff]  }
  0x45   : > { %3408 = vmatprep.subr.bf16.mxu1 %v3868_v37  ;;  %3520 = vmatprep.mubr.bf16.mxu0 %v4346_v27  ;;  %v1556_v18 = vsel %vm4129_vm3, %v1551_v29, %v1555_v6  ;;  %v1116_v60 = vrot.slane %v4164_v3, 5  ;;  %v2946_v47 = vrot.slane %v4113_v32, 9  ;;  %v1111_v0 = vrot.slane %v1109_v51, 4 }
  0x46   : > { %3535 = vmatpush3.bf16.msra.mxu0 %v3867_v33  ;;  %v1561_v21 = vrot.slane %v1560_v40, 4  ;;  %v1106_v59 = vsel %vm4332_vm6, %v1104_v50, %v1105_v24  ;;  %v2947_v6 = vrot.slane %v4157_v62, 9  ;;  %v1119_v10 = vrot.slane %v4167_v8, 5 }
  0x47   : > { %3393 = vmatmul.mubr.bf16.gmra.mrb[12].mxu1 %v4346_v27  ;;  %3536 = vmatprep.subr.bf16.mxu0 %v3869_v13  ;;  %v4367_v33 = vcombine.low %v1103_v42, %v1106_v59  ;;  %v1118_v7 = vrot.slane %v1116_v60, 4  ;;  %v1110_v11 = vsel %vm4332_vm6, %v2946_v47, %v1109_v51  ;;  %v1113_v8 = vsel %vm4332_vm6, %v1111_v0, %v1112_v55 }
  0x48   : > { %v1566_v48 = vsel %vm4129_vm3, %v1561_v21, %v1565_v41  ;;  %3409 = vmatpush3.bf16.msra.mxu1 %v3868_v37  ;;  %3412 = vmatprep.mubr.bf16.mxu1 %v2928_v14  ;;  %v4380_v37 = vcombine.low %v4093_v16, %v4096_v17  ;;  %v4392_v57 = vcombine.low %v4113_v32, %v4125_v38  ;;  %v1123_v16 = vrot.slane %v4185_v25, 5  ;;  %v3875_v17 = vld [vmem:[%s4796_s3 + $0x88] sm:$0xff]  }
  0x49   : > { %v4370_v1 = vcombine.low %v1556_v18, %v1566_v48  ;;  %3410 = vmatprep.subr.bf16.mxu1 %v3870_v46  ;;  %v1117_v9 = vsel %vm4332_vm6, %v2947_v6, %v1116_v60  ;;  %v1130_v14 = vrot.slane %v4216_v63, 5  ;;  %v4405_v32 = vcombine.low %v4299_v28, %v4308_v43 }
  0x4a   : > { %3537 = vmatpush3.bf16.msra.mxu0 %v3869_v13  ;;  %v1120_v13 = vsel %vm4332_vm6, %v1118_v7, %v1119_v10  ;;  %v4408_v38 = vcombine.low %v1110_v11, %v1113_v8  ;;  %v2948_v24 = vrot.slane %v4177_v19, 9  ;;  %v1125_v29 = vrot.slane %v1123_v16, 4  ;;  %v3885_v10 = vld [vmem:[%s4796_s3 + $0xa0] sm:$0xff]  }
  0x4b   : > { %3521 = vmatmul.mubr.bf16.gmra.mrb[12].mxu0 %v4370_v1  ;;  %3538 = vmatprep.subr.bf16.mxu0 %v3871_v56  ;;  %v1126_v40 = vrot.slane %v4190_v30, 5  ;;  %v4416_v41 = vcombine.low %v1117_v9, %v1120_v13  ;;  %v2949_v42 = vrot.slane %v4212_v58, 9  ;;  %v1132_v50 = vrot.slane %v1130_v14, 4  ;;  %v3880_v30 = vld [vmem:[%s4796_s3 + $0x190] sm:$0xff]  }
  0x4c   : > { %3411 = vmatpush3.bf16.msra.mxu1 %v3870_v46  ;;  %3540 = vmatprep.mubr.bf16.mxu0 %v4367_v33  ;;  %v3879_v46 = vld [vmem:[%s4796_s3 + $0x90] sm:$0xff]   ;;  %v1133_v51 = vrot.slane %v4222_v4, 5  ;;  %v1098_v55 = vrot.slane %v4122_v36, 5  ;;  %v4427_v18 = vcombine.low %v4157_v62, %v4164_v3  ;;  %v1124_v21 = vsel %vm4332_vm6, %v2948_v24, %v1123_v16  ;;  %v3881_v62 = vld [vmem:[%s4796_s3 + $0x98] sm:$0xff]  }
  0x4d   : > { %3428 = vmatprep.subr.bf16.mxu1 %v3873_v5  ;;  %v1127_v4 = vsel %vm4332_vm6, %v1125_v29, %v1126_v40  ;;  %v1137_v36 = vrot.slane %v4246_v26, 5  ;;  %v1095_v3 = vrot.slane %v4120_v35, 5  ;;  %v4445_v59 = vcombine.low %v4177_v19, %v4185_v25  ;;  %v3882_v35 = vld [vmem:[%s4796_s3 + $0x198] sm:$0xff]  }
  0x4e   : > { %3539 = vmatpush3.bf16.msra.mxu0 %v3871_v56  ;;  %v2944_v56 = vrot.slane %v4118_v34, 9  ;;  %v1131_v60 = vsel %vm4332_vm6, %v2949_v42, %v1130_v14  ;;  %v1134_v34 = vsel %vm4332_vm6, %v1132_v50, %v1133_v51  ;;  %v1144_v48 = vrot.slane %v4279_v45, 5  ;;  %v3892_v51 = vld [vmem:[%s4796_s3 + $0x1b0] sm:$0xff]  }
  0x4f   : > { %3413 = vmatmul.mubr.bf16.vlgmr.msra.gmra.mrb[0].mxu1 %v4380_v37  ;;  %3556 = vmatprep.subr.bf16.mxu0 %v3874_v49  ;;  %v4453_v47 = vcombine.low %v1124_v21, %v1127_v4  ;;  %v2950_v0 = vrot.slane %v4236_v15, 9  ;;  %v1097_v25 = vrot.slane %v1095_v3, 4  ;;  %v1140_v6 = vrot.slane %v4251_v31, 5  ;;  %v3896_v21 = vld [vmem:[%s4796_s3 + $0x1c0] sm:$0xff]   ;;  %v3897_v4 = vld [vmem:[%s4796_s3 + $0xc8] sm:$0xff]  }
  0x50   : > { %3429 = vmatpush3.bf16.msra.mxu1 %v3873_v5  ;;  %3416 = vmatprep.mubr.bf16.mxu1 %v4392_v57  ;;  %v4461_v19 = vsel %vm4332_vm6, %v2944_v56, %v1095_v3  ;;  %v1139_v5 = vrot.slane %v1137_v36, 4  ;;  %v4464_v7 = vcombine.low %v1131_v60, %v1134_v34  ;;  %v1146_v8 = vrot.slane %v1144_v48, 4  ;;  %v3899_v56 = vld [vmem:[%s4796_s3 + $0xd0] sm:$0xff]   ;;  %v3902_v3 = vld [vmem:[%s4796_s3 + $0x1d8] sm:$0xff]   ;;  %v3903_v60 = vld [vmem:[%s4796_s3 + $0xe0] sm:$0xff]  }
  0x51   : > { %3430 = vmatprep.subr.bf16.mxu1 %v3875_v17  ;;  %v1099_v11 = vsel %vm4332_vm6, %v1097_v25, %v1098_v55  ;;  %v1147_v16 = vrot.slane %v4282_v2, 5  ;;  %v1138_v9 = vsel %vm4332_vm6, %v2950_v0, %v1137_v36  ;;  %v3886_v2 = vld [vmem:[%s4796_s3 + $0x1a0] sm:$0xff]   ;;  %v1752_v14 = vrot.slane %v4308_v43, 5  ;;  %v3894_v55 = vld [vmem:[%s4796_s3 + $0x1b8] sm:$0xff]   ;;  %v3898_v36 = vld [vmem:[%s4796_s3 + $0x1c8] sm:$0xff]  }
  0x52   : > { %v2968_v31 = vcombine.low %v4461_v19, %v1099_v11  ;;  %v1141_v13 = vsel %vm4332_vm6, %v1139_v5, %v1140_v6  ;;  %v3034_v29 = vrot.slane %v4299_v28, 9  ;;  %v3891_v28 = vld [vmem:[%s4796_s3 + $0xb0] sm:$0xff]   ;;  %v3904_v34 = vld [vmem:[%s4796_s3 + $0x1e0] sm:$0xff]   ;;  %v3906_v0 = vld [vmem:[%s4796_s3 + $0x1e8] sm:$0xff]  }
  0x53   : > { %3541 = vmatmul.mubr.bf16.vlgmr.msra.gmra.mrb[0].mxu0 %v4408_v38  ;;  %v1148_v24 = vsel %vm4332_vm6, %v1146_v8, %v1147_v16  ;;  %v4501_v43 = vcombine.low %v1138_v9, %v1141_v13  ;;  %v1754_v40 = vrot.slane %v1752_v14, 4  ;;  %v451_v19 = vld [vmem:[%s4593_s11] sm:$0xf]  ;;  %v452_v25 = vld [vmem:[%s4593_s11 + $0x4] sm:$0xf]  ;;  %v3908_v6 = vld [vmem:[%s4796_s3 + $0xf0] sm:$0xff]  }
  0x54   : > { %3557 = vmatpush3.bf16.msra.mxu0 %v3874_v49  ;;  %3431 = vmatpush3.bf16.msra.mxu1 %v3875_v17  ;;  %v2951_v49 = vrot.slane %v4272_v61, 9  ;;  %v4478_v17 = vcombine.low %v4212_v58, %v4216_v63  ;;  %v3887_v58 = vld [vmem:[%s4796_s3 + $0xa8] sm:$0xff]   ;;  %v4494_v63 = vcombine.low %v4236_v15, %v4246_v26  ;;  %v1753_v42 = vsel %vm4332_vm6, %v3034_v29, %v1752_v14  ;;  %v3909_v11 = vld [vmem:[%s4796_s3 + $0x1f0] sm:$0xff]   ;;  %v3910_v8 = vld [vmem:[%s4796_s3 + $0xf8] sm:$0xff]  }
  0x55   : > { %3558 = vmatprep.subr.bf16.mxu0 %v3876_v23  ;;  %3544 = vmatprep.mubr.bf16.mxu0 %v4416_v41  ;;  %v3888_v15 = vld [vmem:[%s4796_s3 + $0x1a8] sm:$0xff]   ;;  %v3912_v9 = vld [vmem:[%s4796_s3 + $0x200] sm:$0xff]  }
  0x56   : > { %3432 = vmatprep.subr.bf16.mxu1 %v3879_v46  ;;  %v3913_v13 = vld [vmem:[%s4796_s3 + $0x208] sm:$0xff]  }
  0x57   : > { %3417 = vmatmul.mubr.bf16.gmra.mrb[4].mxu1 %v4427_v18 }
  0x58   : > { %3559 = vmatpush3.bf16.msra.mxu0 %v3876_v23  ;;  %3433 = vmatpush3.bf16.msra.mxu1 %v3879_v46  ;;  %v1145_v23 = vsel %vm4332_vm6, %v2951_v49, %v1144_v48  ;;  %v1755_v46 = vrot.slane %v4311_v44, 5  ;;  %v4517_v44 = vcombine.low %v4272_v61, %v4279_v45  ;;  %v3893_v61 = vld [vmem:[%s4796_s3 + $0xb8] sm:$0xff]   ;;  %v3905_v48 = vld [vmem:[%s4796_s3 + $0xe8] sm:$0xff]  }
  0x59   : > { %3560 = vmatprep.subr.bf16.mxu0 %v3880_v30  ;;  %3434 = vmatprep.subr.bf16.mxu1 %v3881_v62  ;;  %v4508_v26 = vcombine.low %v1145_v23, %v1148_v24 }
  0x5a   : > { %3420 = vmatprep.mubr.bf16.mxu1 %v4445_v59  ;;  %v1756_v50 = vsel %vm4332_vm6, %v1754_v40, %v1755_v46 }
  0x5b   : > { %3545 = vmatmul.mubr.bf16.gmra.mrb[4].mxu0 %v4453_v47  ;;  %v4532_v45 = vcombine.low %v1753_v42, %v1756_v50 }
  0x5c   : > { %3561 = vmatpush3.bf16.msra.mxu0 %v3880_v30  ;;  %3435 = vmatpush3.bf16.msra.mxu1 %v3881_v62  ;;  %v3895_v30 = vld [vmem:[%s4796_s3 + $0xc0] sm:$0xff]   ;;  %v3901_v62 = vld [vmem:[%s4796_s3 + $0xd8] sm:$0xff]  }
  0x5d   : > { %3562 = vmatprep.subr.bf16.mxu0 %v3882_v35  ;;  %3548 = vmatprep.mubr.bf16.mxu0 %v4464_v7 }
  0x5e   : > { %3436 = vmatprep.subr.bf16.mxu1 %v3885_v10 }
  0x5f   : > { %3421 = vmatmul.mubr.bf16.gmra.mrb[8].mxu1 %v4478_v17 }
  0x60   : > { %3563 = vmatpush3.bf16.msra.mxu0 %v3882_v35  ;;  %3437 = vmatpush3.bf16.msra.mxu1 %v3885_v10  ;;  %v455_v35 = vstv %s454_s16 }
  0x61   : > { %3564 = vmatprep.subr.bf16.mxu0 %v3886_v2  ;;  %3438 = vmatprep.subr.bf16.mxu1 %v3887_v58  ;;  %vm4601_vm7 = vcmp.eq.s32.totalorder %v455_v35, 1 }
  0x62   : > { %3424 = vmatprep.mubr.bf16.mxu1 %v4494_v63  ;;  %v4612_v10 = vsel %vm4601_vm7, 0, %v451_v19  ;;  %v4616_v49 = vsel %vm4601_vm7, 0, %v452_v25 }
  0x63   : > { %3549 = vmatmul.mubr.bf16.gmra.mrb[8].mxu0 %v4501_v43  ;;  %v3076_v16 = vcombine.low %v4612_v10, %v4616_v49  ;;  %v2137_v14 = vshrl.u32 %v4616_v49, 16  ;;  %v3110_v39 = vrot.slane %v4612_v10, 9 }
  0x64   : > { %3565 = vmatpush3.bf16.msra.mxu0 %v3886_v2  ;;  %3439 = vmatpush3.bf16.msra.mxu1 %v3887_v58  ;;  %v2127_v2 = vshll.u32 %v4612_v10, 16  ;;  %v453_v58 = vld [vmem:[%s4593_s11 + $0x8] sm:$0x1]  ;;  %s2895_s11 = sshll.u32 %s436_s30, 1 }
  0x65   : > { %3566 = vmatprep.subr.bf16.mxu0 %v3888_v15  ;;  %3552 = vmatprep.mubr.bf16.mxu0 %v4508_v26  ;;  %v2139_v29 = vrot.slane %v2137_v14, 4  ;;  %v459_v40 = vsel %vm4601_vm7, 0, %v453_v58  ;;  %v4707_v14 = vld [vmem:[%s4797_s4] ss:$0 sm:$0xff]  ;;  %s438_s17 = scalar_lea.vmem %s4799_s6, %s2895_s11 }
  0x66   : > { %3440 = vmatprep.subr.bf16.mxu1 %v3891_v28  ;;  %v2129_v23 = vrot.slane %v2127_v2, 5 }
  0x67   : > { %3425 = vmatmul.mubr.bf16.gmra.mrb[12].mxu1 %v4517_v44 }
  0x68   : > { %3567 = vmatpush3.bf16.msra.mxu0 %v3888_v15  ;;  %3441 = vmatpush3.bf16.msra.mxu1 %v3891_v28  ;;  %v2143_v15 = vshll.u32 %v459_v40, 16  ;;  %v3917_v28 = vld [vmem:[%s4796_s3 + $0x228] sm:$0xff]  }
  0x69   : > { %3568 = vmatprep.subr.bf16.mxu0 %v3892_v51  ;;  %3442 = vmatprep.subr.bf16.mxu1 %v3893_v61 }
  0x6a   : > { %3444 = vmatprep.mubr.bf16.mxu1 %v2968_v31  ;;  %v3911_v31 = vld [vmem:[%s4796_s3 + $0x1f8] sm:$0xff]  }
  0x6b   : > { %3553 = vmatmul.mubr.bf16.gmra.mrb[12].mxu0 %v4532_v45 }
  0x6c   : > { %3569 = vmatpush3.bf16.msra.mxu0 %v3892_v51  ;;  %3443 = vmatpush3.bf16.msra.mxu1 %v3893_v61  ;;  %v2335_v61 = vrot.slane %v459_v40, 5 }
  0x6d   : > { %3570 = vmatprep.subr.bf16.mxu0 %v3894_v55  ;;  %3572 = vmatprep.mubr.bf16.mxu0 %v4392_v57 }
  0x6e   : > { %3460 = vmatprep.subr.bf16.mxu1 %v3895_v30 }
  0x6f   : > { %3445 = vmatmul.mubr.bf16.vlgmr.msra.gmra.mrb[0].mxu1 %v4367_v33  ;;  %v3900_v33 = vld [vmem:[%s4796_s3 + $0x1d0] sm:$0xff]  }
  0x70   : > { %3571 = vmatpush3.bf16.msra.mxu0 %v3894_v55  ;;  %3461 = vmatpush3.bf16.msra.mxu1 %v3895_v30 }
  0x71   : > { %3588 = vmatprep.subr.bf16.mxu0 %v3896_v21  ;;  %3462 = vmatprep.subr.bf16.mxu1 %v3897_v4 }
  0x72   : > { %3448 = vmatprep.mubr.bf16.mxu1 %v4408_v38 }
  0x73   : > { %3573 = vmatmul.mubr.bf16.vlgmr.msra.gmra.mrb[0].mxu0 %v4427_v18 }
  0x74   : > { %3589 = vmatpush3.bf16.msra.mxu0 %v3896_v21  ;;  %3463 = vmatpush3.bf16.msra.mxu1 %v3897_v4 }
  0x75   : > { %3590 = vmatprep.subr.bf16.mxu0 %v3898_v36  ;;  %3576 = vmatprep.mubr.bf16.mxu0 %v4445_v59 }
  0x76   : > { %3464 = vmatprep.subr.bf16.mxu1 %v3899_v56 }
  0x77   : > { %3449 = vmatmul.mubr.bf16.gmra.mrb[4].mxu1 %v4416_v41 }
  0x78   : > { %3591 = vmatpush3.bf16.msra.mxu0 %v3898_v36  ;;  %3465 = vmatpush3.bf16.msra.mxu1 %v3899_v56 }
  0x79   : > { %3592 = vmatprep.subr.bf16.mxu0 %v3900_v33  ;;  %3466 = vmatprep.subr.bf16.mxu1 %v3901_v62 }
  0x7a   : > { %3452 = vmatprep.mubr.bf16.mxu1 %v4453_v47 }
  0x7b   : > { %3577 = vmatmul.mubr.bf16.gmra.mrb[4].mxu0 %v4478_v17 }
  0x7c   : > { %3593 = vmatpush3.bf16.msra.mxu0 %v3900_v33  ;;  %3467 = vmatpush3.bf16.msra.mxu1 %v3901_v62 }
  0x7d   : > { %3594 = vmatprep.subr.bf16.mxu0 %v3902_v3  ;;  %3580 = vmatprep.mubr.bf16.mxu0 %v4494_v63 }
  0x7e   : > { %3468 = vmatprep.subr.bf16.mxu1 %v3903_v60 }
  0x7f   : > { %3453 = vmatmul.mubr.bf16.gmra.mrb[8].mxu1 %v4464_v7 }
  0x80   : > { %3595 = vmatpush3.bf16.msra.mxu0 %v3902_v3  ;;  %3469 = vmatpush3.bf16.msra.mxu1 %v3903_v60 }
  0x81   : > { %3596 = vmatprep.subr.bf16.mxu0 %v3904_v34  ;;  %3470 = vmatprep.subr.bf16.mxu1 %v3905_v48 }
  0x82   : > { %3456 = vmatprep.mubr.bf16.mxu1 %v4501_v43 }
  0x83   : > { %3581 = vmatmul.mubr.bf16.gmra.mrb[8].mxu0 %v4517_v44 }
  0x84   : > { %3597 = vmatpush3.bf16.msra.mxu0 %v3904_v34  ;;  %3471 = vmatpush3.bf16.msra.mxu1 %v3905_v48 }
  0x85   : > { %3598 = vmatprep.subr.bf16.mxu0 %v3906_v0  ;;  %3584 = vmatprep.mubr.bf16.mxu0 %v4405_v32 }
  0x86   : > { %3472 = vmatprep.subr.bf16.mxu1 %v3908_v6 }
  0x87   : > { %3457 = vmatmul.mubr.bf16.gmra.mrb[12].mxu1 %v4508_v26 }
  0x88   : > { %3599 = vmatpush3.bf16.msra.mxu0 %v3906_v0  ;;  %3473 = vmatpush3.bf16.msra.mxu1 %v3908_v6 }
  0x89   : > { %3600 = vmatprep.subr.bf16.mxu0 %v3909_v11  ;;  %3474 = vmatprep.subr.bf16.mxu1 %v3910_v8 }
  0x8a   : > { %3476 = vmatprep.mubr.bf16.mxu1 %v4380_v37  ;;  %v3914_v37 = vld [vmem:[%s4796_s3 + $0x210] sm:$0xff]  }
  0x8b   : > { %3585 = vmatmul.mubr.bf16.gmra.mrb[12].mxu0 %v3076_v16 }
  0x8c   : > { %3601 = vmatpush3.bf16.msra.mxu0 %v3909_v11  ;;  %3475 = vmatpush3.bf16.msra.mxu1 %v3910_v8 }
  0x8d   : > { %3602 = vmatprep.subr.bf16.mxu0 %v3911_v31  ;;  %3604 = vmatprep.mubr.bf16.mxu0 %v4208_v53  ;;  %v2124_v53 = vshrl.u32 %v4612_v10, 16 }
  0x8e   : > { %3652 = vmatprep.subr.bf16.mxu1 %v3912_v9 }
  0x8f   : > { %3477 = vmatmul.mubr.bf16.vlgmr.msra.gmra.mrb[0].mxu1 %v4392_v57  ;;  %v2133_v57 = vshll.u32 %v4616_v49, 16 }
  0x90   : > { %3603 = vmatpush3.bf16.msra.mxu0 %v3911_v31  ;;  %3660 = vmatpush3.bf16.msra.mxu1 %v3912_v9 }
  0x91   : > { %3620 = vmatprep.subr.bf16.mxu0 %v3912_v9  ;;  %3653 = vmatprep.subr.bf16.mxu1 %v3913_v13  ;;  %v2135_v24 = vrot.slane %v2133_v57, 5 }
  0x92   : > { %3480 = vmatprep.mubr.bf16.mxu1 %v4427_v18  ;;  %v3915_v18 = vld [vmem:[%s4796_s3 + $0x218] sm:$0xff]  }
  0x93   : > { %3605 = vmatmul.mubr.bf16.vlgmr.msra.gmra.mrb[0].mxu0 %v4238_v20  ;;  %v2126_v20 = vrot.slane %v2124_v53, 4  ;;  %v2140_v46 = vor.u32 %v2139_v29, %v2135_v24 }
  0x94   : > { %3621 = vmatpush3.bf16.msra.mxu0 %v3912_v9  ;;  %3661 = vmatpush3.bf16.msra.mxu1 %v3913_v13 }
  0x95   : > { %3622 = vmatprep.subr.bf16.mxu0 %v3913_v13  ;;  %3608 = vmatprep.mubr.bf16.mxu0 %v4267_v52  ;;  %v3916_v52 = vld [vmem:[%s4796_s3 + $0x220] sm:$0xff]   ;;  %v2141_v42 = vrot.slane %v2140_v46, 4 }
  0x96   : > { %3654 = vmatprep.subr.bf16.mxu1 %v3914_v37 }
  0x97   : > { %3481 = vmatmul.mubr.bf16.gmra.mrb[4].mxu1 %v4445_v59  ;;  %v2130_v59 = vor.u32 %v2129_v23, %v2126_v20 }
  0x98   : > { %3623 = vmatpush3.bf16.msra.mxu0 %v3913_v13  ;;  %3662 = vmatpush3.bf16.msra.mxu1 %v3914_v37 }
  0x99   : > { %3624 = vmatprep.subr.bf16.mxu0 %v3914_v37  ;;  %3655 = vmatprep.subr.bf16.mxu1 %v3915_v18 }
  0x9a   : > { %3484 = vmatprep.mubr.bf16.mxu1 %v4478_v17  ;;  %v2131_v17 = vrot.slane %v2130_v59, 4 }
  0x9b   : > { %3609 = vmatmul.mubr.bf16.gmra.mrb[4].mxu0 %v4293_v22  ;;  %v2145_v22 = vrot.slane %v2143_v15, 5 }
  0x9c   : > { %3625 = vmatpush3.bf16.msra.mxu0 %v3914_v37  ;;  %3663 = vmatpush3.bf16.msra.mxu1 %v3915_v18 }
  0x9d   : > { %3626 = vmatprep.subr.bf16.mxu0 %v3915_v18  ;;  %3612 = vmatprep.mubr.bf16.mxu0 %v4319_v54  ;;  %v3918_v54 = vld [vmem:[%s4796_s3 + $0x230] sm:$0xff]   ;;  %v2146_v50 = vsel %vm4129_vm3, %v2141_v42, %v2145_v22 }
  0x9e   : > { %3656 = vmatprep.subr.bf16.mxu1 %v3916_v52 }
  0x9f   : > { %3485 = vmatmul.mubr.bf16.gmra.mrb[8].mxu1 %v4494_v63  ;;  %v2136_v63 = vsel %vm4129_vm3, %v2131_v17, %v2135_v24 }
  0xa0   : > { %3627 = vmatpush3.bf16.msra.mxu0 %v3915_v18  ;;  %3664 = vmatpush3.bf16.msra.mxu1 %v3916_v52  ;;  %v3101_v51 = vcombine.low %v2136_v63, %v2146_v50 }
  0xa1   : > { %3628 = vmatprep.subr.bf16.mxu0 %v3916_v52  ;;  %3657 = vmatprep.subr.bf16.mxu1 %v3917_v28 }
  0xa2   : > { %3488 = vmatprep.mubr.bf16.mxu1 %v4517_v44  ;;  %v3919_v44 = vld [vmem:[%s4796_s3 + $0x238] sm:$0xff]  }
  0xa3   : > { %3613 = vmatmul.mubr.bf16.gmra.mrb[8].mxu0 %v4346_v27  ;;  %v2332_v27 = vrot.slane %v4616_v49, 5 }
  0xa4   : > { %3629 = vmatpush3.bf16.msra.mxu0 %v3916_v52  ;;  %3665 = vmatpush3.bf16.msra.mxu1 %v3917_v28 }
  0xa5   : > { %3630 = vmatprep.subr.bf16.mxu0 %v3917_v28  ;;  %3616 = vmatprep.mubr.bf16.mxu0 %v4370_v1  ;;  %v2334_v1 = vrot.slane %v2332_v27, 4 }
  0xa6   : > { %3658 = vmatprep.subr.bf16.mxu1 %v3918_v54 }
  0xa7   : > { %3489 = vmatmul.mubr.bf16.gmra.mrb[12].mxu1 %v4405_v32  ;;  %v2333_v32 = vsel %vm4332_vm6, %v3110_v39, %v2332_v27 }
  0xa8   : > { %3631 = vmatpush3.bf16.msra.mxu0 %v3917_v28  ;;  %3666 = vmatpush3.bf16.msra.mxu1 %v3918_v54 }
  0xa9   : > { %3632 = vmatprep.subr.bf16.mxu0 %v3918_v54  ;;  %3659 = vmatprep.subr.bf16.mxu1 %v3919_v44 }
  0xaa   : > { %3644 = vmatprep.mubr.bf16.mxu1 %v4501_v43  ;;  %v2336_v43 = vsel %vm4332_vm6, %v2334_v1, %v2335_v61 }
  0xab   : > { %3617 = vmatmul.mubr.bf16.gmra.mrb[12].mxu0 %v3101_v51  ;;  %v3127_v55 = vcombine.low %v2333_v32, %v2336_v43 }
  0xac   : > { %3633 = vmatpush3.bf16.msra.mxu0 %v3918_v54  ;;  %3667 = vmatpush3.bf16.msra.mxu1 %v3919_v44 }
  0xad   : > { %3634 = vmatprep.subr.bf16.mxu0 %v3919_v44  ;;  %3636 = vmatprep.mubr.bf16.mxu0 %v4408_v38 }
  0xaf   : > { %3645 = vmatmul.mubr.bf16.vlgmr.msra.gmra.mrb[16].mxu1 %v4508_v26 }
  0xb0   : > { %3635 = vmatpush3.bf16.msra.mxu0 %v3919_v44  ;;  %3648 = vmatprep.mubr.bf16.mxu1 %v4532_v45 }
  0xb3   : > { %3637 = vmatmul.mubr.bf16.vlgmr.msra.gmra.mrb[0].mxu0 %v4416_v41 }
  0xb4   : > { %3640 = vmatprep.mubr.bf16.mxu0 %v4453_v47 }
  0xb7   : > { %3649 = vmatmul.mubr.bf16.gmra.mrb[20].mxu1 %v3127_v55 }
  0xbb   : > { %3641 = vmatmul.mubr.bf16.gmra.mrb[4].mxu0 %v4464_v7 }
 0x162   : > { %v3478_v38 = vpop.f32.mrb[0].mxu1 }
 0x163   : > { %v1464_v26 = vpop.f32.mrb[1].mxu1 }
 0x164   : > { %v3479_v30 = vpop.f32.mrb[2].mxu1 }
 0x165   : > { %v1467_v21 = vpop.f32.mrb[3].mxu1 }
 0x16a   : > { %v4694_v45 = vpop.f32.mrb[4].mxu1 }
 0x16b   : > { %v4696_v4 = vpop.f32.mrb[5].mxu1 }
 0x16c   : > { %v4698_v36 = vpop.f32.mrb[6].mxu1 }
 0x16d   : > { %v4700_v12 = vpop.f32.mrb[7].mxu1 }
 0x172   : > { %v3486_v41 = vpop.f32.mrb[8].mxu1 }
 0x173   : > { %v1496_v56 = vpop.f32.mrb[9].mxu1 }
 0x174   : > { %v3487_v33 = vpop.f32.mrb[10].mxu1 }
 0x175   : > { %v1499_v47 = vpop.f32.mrb[11].mxu1 }
 0x176   : > { %v3614_v62 = vpop.f32.mrb[8].mxu0 }
 0x177   : > { %v3676_v7 = vadd.f32 %v3614_v62, %v3486_v41  ;;  %v2282_v3 = vpop.f32.mrb[9].mxu0 }
 0x178   : > { %v3678_v60 = vadd.f32 %v2282_v3, %v1496_v56  ;;  %v3615_v34 = vpop.f32.mrb[10].mxu0 }
 0x179   : > { %v3680_v48 = vadd.f32 %v3615_v34, %v3487_v33  ;;  %v2285_v35 = vpop.f32.mrb[11].mxu0 }
 0x17a   : > { %v3682_v0 = vadd.f32 %v2285_v35, %v1499_v47  ;;  %v3490_v19 = vpop.f32.mrb[12].mxu1 }
 0x17b   : > { %v1512_v25 = vpop.f32.mrb[13].mxu1 }
 0x17c   : > { %v3491_v5 = vpop.f32.mrb[14].mxu1 }
 0x17d   : > { %v1515_v6 = vpop.f32.mrb[15].mxu1 }
 0x17e   : > { %v3618_v10 = vpop.f32.mrb[12].mxu0 }
 0x17f   : > { %v3684_v49 = vadd.f32 %v3618_v10, %v3490_v19  ;;  %v2298_v11 = vpop.f32.mrb[13].mxu0 }
 0x180   : > { %v3686_v8 = vadd.f32 %v2298_v11, %v1512_v25  ;;  %v3619_v16 = vpop.f32.mrb[14].mxu0 }
 0x181   : > { %v3688_v31 = vadd.f32 %v3619_v16, %v3491_v5  ;;  %v2301_v9 = vpop.f32.mrb[15].mxu0 }
 0x182   : > { %v3690_v13 = vadd.f32 %v2301_v9, %v1515_v6  ;;  %v3646_v37 = vpop.f32.mrb[16].mxu1 }
 0x183   : > { %v3677_v53 = vadd.f32 %v3676_v7, %v3646_v37  ;;  %v2472_v2 = vpop.f32.mrb[17].mxu1 }
 0x184   : > { %v3679_v57 = vadd.f32 %v3678_v60, %v2472_v2  ;;  %v3647_v18 = vpop.f32.mrb[18].mxu1 }
 0x185   : > { %v3681_v58 = vadd.f32 %v3680_v48, %v3647_v18  ;;  %v2475_v20 = vpop.f32.mrb[19].mxu1  ;;  %v4710_v40 = vadd.f32 %v3677_v53, %v4707_v14 }
 0x186   : > { %v3638_v23 = vpop.f32.mrb[0].mxu0  ;;  %v3683_v24 = vadd.f32 %v3682_v0, %v2475_v20  ;;  %v4716_v15 = vadd.f32 %v3679_v57, %v4707_v14 }
 0x187   : > { %v3668_v29 = vadd.f32 %v3638_v23, %v3478_v38  ;;  %v2440_v52 = vpop.f32.mrb[1].mxu0  ;;  %v4713_v59 = vadd.f32 %v3681_v58, %v4707_v14 }
 0x188   : > { %v3669_v46 = vadd.f32 %v2440_v52, %v1464_v26  ;;  %v3639_v28 = vpop.f32.mrb[2].mxu0  ;;  %v4724_v17 = vadd.f32 %v3683_v24, %v4707_v14 }
 0x189   : > { %v3670_v42 = vadd.f32 %v3639_v28, %v3479_v30  ;;  %v3201_v22 = vpack.c.bf16 %v4713_v59, %v4710_v40  ;;  %v2443_v54 = vpop.f32.mrb[3].mxu0  ;;  %v2528_v27 = vadd.f32 %v3668_v29, %v4707_v14 }
 0x18a   : > { %v2526_v63 = vadd.f32 %v3669_v46, %v4707_v14  ;;  %v3671_v50 = vadd.f32 %v2443_v54, %v1467_v21  ;;  %v3196_v44 = vpack.c.bf16 %v4724_v17, %v4716_v15  ;;  %v3650_v51 = vpop.f32.mrb[20].mxu1 }
 0x18b   : > { %v2529_v39 = vadd.f32 %v3670_v42, %v4707_v14  ;;  %3217 = vst [vmem:[%s4721_s13 + $0x28] sm:$0xff] %v3201_v22   ;;  %v3685_v1 = vadd.f32 %v3684_v49, %v3650_v51  ;;  %v2488_v61 = vpop.f32.mrb[21].mxu1  ;;  %v2645_v48 = vmul.f32 %v2528_v27, %v2528_v27  ;;  %v2651_v22 = vmul.f32 %v4716_v15, %v4716_v15 }
 0x18c   : > { %v2527_v32 = vadd.f32 %v3671_v50, %v4707_v14  ;;  %3216 = vst [vmem:[%s4721_s13 + $0x20] sm:$0xff] %v3196_v44   ;;  %v3687_v43 = vadd.f32 %v3686_v8, %v2488_v61  ;;  %v3651_v55 = vpop.f32.mrb[22].mxu1  ;;  %v2643_v21 = vmul.f32 %v2526_v63, %v2526_v63  ;;  %v2653_v51 = vmul.f32 %v4710_v40, %v4710_v40 }
 0x18d   : > { %v3181_v38 = vpack.c.bf16 %v2529_v39, %v2528_v27  ;;  %v3689_v26 = vadd.f32 %v3688_v31, %v3651_v55  ;;  %v2491_v30 = vpop.f32.mrb[23].mxu1  ;;  %v2540_v7 = vadd.f32 %v3685_v1, %v4707_v14  ;;  %v2646_v5 = vmul.f32 %v2529_v39, %v2529_v39 }
 0x18e   : > { %v3176_v41 = vpack.c.bf16 %v2527_v32, %v2526_v63  ;;  %v2622_v56 = vadd.f32 %v2527_v32, %v2526_v63  ;;  %v2644_v33 = vmul.f32 %v2527_v32, %v2527_v32  ;;  %v3642_v47 = vpop.f32.mrb[4].mxu0  ;;  %v3691_v34 = vadd.f32 %v3690_v13, %v2491_v30 }
 0x18f   : > { %3213 = vst [vmem:[%s4721_s13 + $0x8] sm:$0xff] %v3181_v38   ;;  %v3672_v62 = vadd.f32 %v3642_v47, %v4694_v45  ;;  %v2456_v3 = vpop.f32.mrb[5].mxu0  ;;  %v4740_v60 = vadd.f32 %v3689_v26, %v4707_v14  ;;  %v2538_v9 = vadd.f32 %v3687_v43, %v4707_v14  ;;  %v2652_v63 = vmul.f32 %v4724_v17, %v4724_v17 }
 0x190   : > { %3177 = vst [vmem:[%s4721_s13] sm:$0xff] %v3176_v41   ;;  %v2623_v35 = vadd.f32 %v2622_v56, %v2528_v27  ;;  %v2659_v0 = vadd.f32 %v2644_v33, %v2643_v21  ;;  %v3673_v19 = vadd.f32 %v2456_v3, %v4696_v4  ;;  %v3643_v25 = vpop.f32.mrb[6].mxu0  ;;  %v2654_v1 = vmul.f32 %v4713_v59, %v4713_v59 }
 0x191   : > { %v3674_v6 = vadd.f32 %v3643_v25, %v4698_v36  ;;  %v3211_v45 = vpack.c.bf16 %v4740_v60, %v2540_v7  ;;  %v2459_v10 = vpop.f32.mrb[7].mxu0  ;;  %v2532_v31 = vadd.f32 %v3672_v62, %v4707_v14  ;;  %v2539_v36 = vadd.f32 %v3691_v34, %v4707_v14 }
 0x192   : > { %v2660_v49 = vadd.f32 %v2659_v0, %v2645_v48  ;;  %v2530_v11 = vadd.f32 %v3673_v19, %v4707_v14  ;;  %v2624_v8 = vadd.f32 %v2623_v35, %v2529_v39  ;;  %v3675_v16 = vadd.f32 %v2459_v10, %v4700_v12 }
 0x193   : > { %v2533_v4 = vadd.f32 %v3674_v6, %v4707_v14  ;;  %3219 = vst [vmem:[%s4721_s13 + $0x38] sm:$0xff] %v3211_v45   ;;  %v3206_v18 = vpack.c.bf16 %v2539_v36, %v2538_v9  ;;  %v2649_v24 = vmul.f32 %v2532_v31, %v2532_v31  ;;  %v2655_v32 = vmul.f32 %v2538_v9, %v2538_v9 }
 0x194   : > { %v2625_v13 = vadd.f32 %v2624_v8, %v2530_v11  ;;  %v2647_v37 = vmul.f32 %v2530_v11, %v2530_v11  ;;  %v2661_v53 = vadd.f32 %v2660_v49, %v2646_v5  ;;  %v2531_v2 = vadd.f32 %v3675_v16, %v4707_v14 }
 0x195   : > { %v3191_v57 = vpack.c.bf16 %v2533_v4, %v2532_v31  ;;  %3218 = vst [vmem:[%s4721_s13 + $0x30] sm:$0xff] %v3206_v18   ;;  %v2650_v46 = vmul.f32 %v2533_v4, %v2533_v4  ;;  %v2657_v30 = vmul.f32 %v2540_v7, %v2540_v7 }
 0x196   : > { %v2662_v12 = vadd.f32 %v2661_v53, %v2647_v37  ;;  %v3186_v58 = vpack.c.bf16 %v2531_v2, %v2530_v11  ;;  %v2626_v20 = vadd.f32 %v2625_v13, %v2531_v2  ;;  %v2648_v23 = vmul.f32 %v2531_v2, %v2531_v2 }
 0x197   : > { %3215 = vst [vmem:[%s4721_s13 + $0x18] sm:$0xff] %v3191_v57  }
 0x198   : > { %3214 = vst [vmem:[%s4721_s13 + $0x10] sm:$0xff] %v3186_v58   ;;  %v2627_v29 = vadd.f32 %v2626_v20, %v2532_v31  ;;  %v2663_v52 = vadd.f32 %v2662_v12, %v2648_v23 }
 0x19a   : > { %v2628_v28 = vadd.f32 %v2627_v29, %v2533_v4  ;;  %v2664_v42 = vadd.f32 %v2663_v52, %v2649_v24 }
 0x19c   : > { %v2629_v14 = vadd.f32 %v2628_v28, %v4716_v15  ;;  %v2665_v54 = vadd.f32 %v2664_v42, %v2650_v46 }
 0x19e   : > { %v2666_v50 = vadd.f32 %v2665_v54, %v2651_v22  ;;  %v2630_v44 = vadd.f32 %v2629_v14, %v4724_v17  ;;  %v2656_v17 = vmul.f32 %v2539_v36, %v2539_v36 }
 0x1a0   : > { %v2631_v27 = vadd.f32 %v2630_v44, %v4710_v40  ;;  %v2667_v39 = vadd.f32 %v2666_v50, %v2652_v63  ;;  %v2658_v40 = vmul.f32 %v4740_v60, %v4740_v60 }
 0x1a2   : > { %v2632_v61 = vadd.f32 %v2631_v27, %v4713_v59  ;;  %v2668_v15 = vadd.f32 %v2667_v39, %v2653_v51 }
 0x1a4   : > { %v2633_v43 = vadd.f32 %v2632_v61, %v2538_v9  ;;  %v2669_v55 = vadd.f32 %v2668_v15, %v2654_v1 }
 0x1a6   : > { %v2634_v38 = vadd.f32 %v2633_v43, %v2539_v36  ;;  %v2670_v26 = vadd.f32 %v2669_v55, %v2655_v32 }
 0x1a8   : > { %v2635_v21 = vadd.f32 %v2634_v38, %v2540_v7  ;;  %v2671_v41 = vadd.f32 %v2670_v26, %v2656_v17 }
 0x1aa   : > { %v2636_v56 = vadd.f32 %v2635_v21, %v4740_v60  ;;  %v2672_v33 = vadd.f32 %v2671_v41, %v2657_v30 }
 0x1ac   : > { %v2637_v59 = vrot.slane %v2636_v56, 4  ;;  %v2673_v47 = vadd.f32 %v2672_v33, %v2658_v40 }
 0x1ae   : > { %v2638_v62 = vadd.f32 %v2637_v59, %v2636_v56  ;;  %v2674_v3 = vrot.slane %v2673_v47, 4 }
 0x1b0   : > { %v2639_v34 = vrot.slane %v2638_v62, 2  ;;  %v2675_v48 = vadd.f32 %v2674_v3, %v2673_v47 }
 0x1b2   : > { %v2640_v35 = vadd.f32 %v2639_v34, %v2638_v62  ;;  %v2676_v0 = vrot.slane %v2675_v48, 2 }
 0x1b4   : > { %v2641_v7 = vrot.slane %v2640_v35, 1  ;;  %v2677_v19 = vadd.f32 %v2676_v0, %v2675_v48 }
 0x1b6   : > { %v2678_v25 = vrot.slane %v2677_v19, 1  ;;  %v2642_v60 = vadd.f32 %v2641_v7, %v2640_v35 }
 0x1b8   : > { %v2679_v5 = vadd.f32 %v2678_v25, %v2677_v19 }
 0x1ba   : > { %v2681_v6 = vsel %vm2680_vm8, %v2642_v60, %v2679_v5 }
 0x1bb   : > { %2682 = vst [vmem:[%s438_s17] sm:$0x3] %v2681_v6 }
 0x1bc PF: > { %s17_s25 = sadd.s32 1, %s3958_s25   ;;  %s4807_s21 = smov %s3950_s23 }
 0x1bd   : > { %p14_p0 = scmp.ge.s32.totalorder %s17_s25, 6   ;;  %s4808_s22 = smov %s3954_s24 }
 0x1be   : > { %s4809_s23 = smov %s4812_s26  ;;  %s4810_s24 = smov %s4816_s27 }
 0x1bf   :  { %16 = sbr.rel (!%p14_p0) target bundleno = 3 (0x3), region = 96 }

</bundles_post_ra>
